<compile_context>
chip_gen: v7x
topology: tpu7x:2x2x1
jax: 0.10.0
libtpu: 0.0.40
codegen_flags: <defaults>
</compile_context>

<pallas_src>
import functools

import jax
import jax.numpy as jnp
from jax import lax
from jax.experimental import pallas as pl
from jax.experimental.pallas import tpu as pltpu


def _resblock_kernel(x_ref, w1_ref, b1_ref, w2_ref, b2_ref, w3_ref, b3_ref,
                     colidx_ref, out_ref, ext_ref, cols_ref, *, h, w):
    """Fused ResBlock forward for a small batch of images (padded-flat layout).

    x_ref      : (B, Cin,  Npad)      f32  reflection-padded input, flat spatial
    w*_ref     : (Cout, 9*C)          bf16 packed weights (tap-major, ch-minor)
    b*_ref     : (Cout, 1)            f32  biases
    colidx_ref : (1, Npad)            i32  flat-index % Wp (resident constant)
    out_ref    : (B, Cout, Npad)      f32  padded-flat output (borders garbage)
    ext_ref    : (Cmax, Npad+2(Wp+1)) f32  scratch: flat padded act + margins
    cols_ref   : (9*Cmax, Npad)       bf16 scratch: im2col slab
    """
    bsz, cin, npad = x_ref.shape
    cout = out_ref.shape[1]
    hp, wp = h + 2, w + 2
    base = wp + 1                                  # margin so taps are plain slices

    # Column-border masks for the in-kernel reflection (computed once per step).
    col = colidx_ref[...]                          # (1, Npad) int32: lane % Wp
    is_col0 = col == 0
    is_coll = col == wp - 1

    # Deterministic margins (they only ever feed discarded output columns).
    ext_ref[...] = jnp.zeros_like(ext_ref)

    def stage_input(a, c, reflect):
        """Store an activation (c, Npad) into ext's interior; optionally apply
        the reflection pad (row/col borders) in flat layout."""
        ext_ref[0:c, base:base + npad] = a
        if reflect:
            # Rows: row 0 <- row 2, row Hp-1 <- row Hp-3 (contiguous flat slices).
            ext_ref[0:c, base:base + wp] = \
                ext_ref[0:c, base + 2 * wp:base + 3 * wp]
            ext_ref[0:c, base + (hp - 1) * wp:base + hp * wp] = \
                ext_ref[0:c, base + (hp - 3) * wp:base + (hp - 2) * wp]
            # Columns: col 0 <- col 2, col Wp-1 <- col Wp-3.  Two lane-shifted
            # reads of the row-fixed slab + one select (no strided writes).
            cur = ext_ref[0:c, base:base + npad]
            lft = ext_ref[0:c, base + 2:base + 2 + npad]
            rgt = ext_ref[0:c, base - 2:base - 2 + npad]
            ext_ref[0:c, base:base + npad] = jnp.where(
                is_col0, lft, jnp.where(is_coll, rgt, cur))

    def conv3x3_lrelu(c, w_ref, b_ref):
        # im2col: nine flat lane-shifted slices, cast to bf16 as written.
        for kh in range(3):
            for kw in range(3):
                t = kh * 3 + kw
                off = base + (kh - 1) * wp + (kw - 1)
                cols_ref[t * c:(t + 1) * c, :] = (
                    ext_ref[0:c, off:off + npad].astype(jnp.bfloat16))
        # Single bf16 MXU matmul, f32 accumulation.
        acc = jnp.dot(w_ref[...], cols_ref[0:9 * c, :],
                      preferred_element_type=jnp.float32)
        acc = acc + b_ref[...]
        return jnp.maximum(acc, 0.2 * acc)         # LeakyReLU(negative_slope=0.2)

    for b in range(bsz):                           # static per-step image batch
        stage_input(x_ref[b], cin, reflect=False)  # input already reflection-padded
        h1 = conv3x3_lrelu(cin, w1_ref, b1_ref)    # conv1 output == residual branch
        stage_input(h1, cout, reflect=True)
        r = conv3x3_lrelu(cout, w2_ref, b2_ref)
        stage_input(r, cout, reflect=True)
        r = conv3x3_lrelu(cout, w3_ref, b3_ref)
        out_ref[b] = (r + h1).astype(out_ref.dtype)  # borders garbage; sliced off


def _pack_weight(w_hwio):
    """(3, 3, Cin, Cout) HWIO -> (Cout, 9*Cin) bf16, tap-major / channel-minor."""
    kh, kw, cin, cout = w_hwio.shape
    return jnp.transpose(w_hwio.reshape(kh * kw * cin, cout)).astype(jnp.bfloat16)


def _pick_images_per_step(n):
    """Largest per-step batch that still leaves >= 2 grid steps (v7x: 2 TCs)."""
    if n <= 2:
        return 1
    for b in range(n // 2, 0, -1):
        if n % b == 0:
            return b
    return 1


def resblock_forward(x_nchw, params, *, images_per_step=None):
    """Matches PyTorch ResBlock.forward. Input/output are NCHW float32."""
    n, cin, h, w = x_nchw.shape
    assert h >= 2 and w >= 2, "reflection pad of 1 requires H, W >= 2"
    cout = params["w1"].shape[-1]
    hp, wp = h + 2, w + 2
    npad = hp * wp
    npad_ext = npad + 2 * (wp + 1)
    cmax = max(cin, cout)

    bsz = images_per_step or _pick_images_per_step(n)
    if n % bsz:
        bsz = 1
    grid = (n // bsz,)

    w1 = _pack_weight(params["w1"])
    w2 = _pack_weight(params["w2"])
    w3 = _pack_weight(params["w3"])
    b1 = params["b1"].reshape(cout, 1).astype(jnp.float32)
    b2 = params["b2"].reshape(cout, 1).astype(jnp.float32)
    b3 = params["b3"].reshape(cout, 1).astype(jnp.float32)

    # Reflection pad of the *input* is a single cheap XLA op; the two
    # intermediate reflections happen inside the kernel in flat layout.
    x_pad = jnp.pad(x_nchw.astype(jnp.float32),
                    ((0, 0), (0, 0), (1, 1), (1, 1)), mode="reflect")
    x_flat = x_pad.reshape(n, cin, npad)

    col_idx = (jnp.arange(npad, dtype=jnp.int32) % wp).reshape(1, npad)

    const = lambda i: (0, 0)                # weights/bias/masks stay resident
    kernel = functools.partial(_resblock_kernel, h=h, w=w)

    out_flat = pl.pallas_call(
        kernel,
        out_shape=jax.ShapeDtypeStruct((n, cout, npad), jnp.float32),
        grid=grid,
        in_specs=[
            pl.BlockSpec((bsz, cin, npad), lambda i: (i, 0, 0)),   # x (padded-flat)
            pl.BlockSpec((cout, 9 * cin), const),                  # w1
            pl.BlockSpec((cout, 1), const),                        # b1
            pl.BlockSpec((cout, 9 * cout), const),                 # w2
            pl.BlockSpec((cout, 1), const),                        # b2
            pl.BlockSpec((cout, 9 * cout), const),                 # w3
            pl.BlockSpec((cout, 1), const),                        # b3
            pl.BlockSpec((1, npad), const),                        # col index
        ],
        out_specs=pl.BlockSpec((bsz, cout, npad), lambda i: (i, 0, 0)),
        scratch_shapes=[
            pltpu.VMEM((cmax, npad_ext), jnp.float32),             # flat padded act
            pltpu.VMEM((9 * cmax, npad), jnp.bfloat16),            # bf16 im2col slab
        ],
        compiler_params=pltpu.CompilerParams(
            dimension_semantics=("parallel",)),    # v7x: 2 TCs split the grid
    )(x_flat, w1, b1, w2, b2, w3, b3, col_idx)

    # Drop the padded border columns (they hold garbage by construction).
    return out_flat.reshape(n, cout, hp, wp)[:, :, 1:hp - 1, 1:wp - 1]


def init_resblock_params(key, in_channels, out_channels):
    """Deterministic synthetic parameters (HWIO weights, (Cout,) biases)."""
    ks = jax.random.split(key, 6)
    s1 = 1.0 / jnp.sqrt(in_channels * 9.0)
    s2 = 1.0 / jnp.sqrt(out_channels * 9.0)
    return {
        "w1": jax.random.normal(ks[0], (3, 3, in_channels, out_channels),
                                jnp.float32) * s1,
        "b1": jax.random.normal(ks[1], (out_channels,), jnp.float32) * 0.01,
        "w2": jax.random.normal(ks[2], (3, 3, out_channels, out_channels),
                                jnp.float32) * s2,
        "b2": jax.random.normal(ks[3], (out_channels,), jnp.float32) * 0.01,
        "w3": jax.random.normal(ks[4], (3, 3, out_channels, out_channels),
                                jnp.float32) * s2,
        "b3": jax.random.normal(ks[5], (out_channels,), jnp.float32) * 0.01,
    }


def _reference_forward(x_nchw, params):
    """Pure-JAX f32 reference (lax.conv) for correctness checking."""
    x = jnp.transpose(x_nchw, (0, 2, 3, 1))
    dn = lax.conv_dimension_numbers(x.shape, params["w1"].shape,
                                    ("NHWC", "HWIO", "NHWC"))

    def conv_lrelu(inp, w, b):
        p = jnp.pad(inp, ((0, 0), (1, 1), (1, 1), (0, 0)), mode="reflect")
        y = lax.conv_general_dilated(p, w, (1, 1), "VALID", dimension_numbers=dn)
        y = y + b.reshape(1, 1, 1, -1)
        return jnp.where(y >= 0.0, y, 0.2 * y)

    h1 = conv_lrelu(x, params["w1"], params["b1"])
    r = conv_lrelu(h1, params["w2"], params["b2"])
    out = conv_lrelu(r, params["w3"], params["b3"]) + h1
    return jnp.transpose(out, (0, 3, 1, 2))


if __name__ == "__main__":
    key = jax.random.PRNGKey(0)
    k_x, k_p = jax.random.split(key)

    N, C_in, C_out, HW = 2, 4, 8, 16
    x = jax.random.normal(k_x, (N, C_in, HW, HW), jnp.float32)   # NCHW input
    params = init_resblock_params(k_p, C_in, C_out)

    fwd = jax.jit(resblock_forward)
    out = jax.block_until_ready(fwd(x, params))

    ref = jax.block_until_ready(_reference_forward(x, params))
    assert out.shape == (N, C_out, HW, HW), out.shape
    # Matmul operands are bf16 (f32 accumulation) across three chained convs,
    # so compare against the pure-f32 reference with a relaxed tolerance.
    max_err = float(jnp.max(jnp.abs(out - ref)))
    assert jnp.allclose(out, ref, atol=5e-2, rtol=5e-2), max_err

    print("KERNEL_OK")
</pallas_src>

<mosaic_0001>
module attributes {stable_mosaic.version = 11 : i64} {
  func.func @_resblock_kernel(%arg0: i32, %arg1: memref<1x4x324xf32, #tpu.memory_space<vmem>>, %arg2: memref<8x36xbf16, #tpu.memory_space<vmem>>, %arg3: memref<8x1xf32, #tpu.memory_space<vmem>>, %arg4: memref<8x72xbf16, #tpu.memory_space<vmem>>, %arg5: memref<8x1xf32, #tpu.memory_space<vmem>>, %arg6: memref<8x72xbf16, #tpu.memory_space<vmem>>, %arg7: memref<8x1xf32, #tpu.memory_space<vmem>>, %arg8: memref<1x324xi32, #tpu.memory_space<vmem>>, %arg9: memref<1x8x324xf32, #tpu.memory_space<vmem>>, %arg10: memref<8x362xf32, #tpu.memory_space<vmem>>, %arg11: memref<72x324xbf16, #tpu.memory_space<vmem>>) attributes {dimension_semantics = [#tpu.dimension_semantics<parallel>], iteration_bounds = array<i64: 2>, scalar_prefetch = 0 : i64, scratch_operands = 2 : i64, tpu.core_type = #tpu.core_type<tc>, window_params = [{transform_indices = @transform_0, window_bounds = array<i64: 1, 4, 324>}, {pipeline_mode = #tpu.pipeline_mode<synchronous>, transform_indices = @transform_1, window_bounds = array<i64: 8, 36>}, {pipeline_mode = #tpu.pipeline_mode<synchronous>, transform_indices = @transform_2, window_bounds = array<i64: 8, 1>}, {pipeline_mode = #tpu.pipeline_mode<synchronous>, transform_indices = @transform_3, window_bounds = array<i64: 8, 72>}, {pipeline_mode = #tpu.pipeline_mode<synchronous>, transform_indices = @transform_4, window_bounds = array<i64: 8, 1>}, {pipeline_mode = #tpu.pipeline_mode<synchronous>, transform_indices = @transform_5, window_bounds = array<i64: 8, 72>}, {pipeline_mode = #tpu.pipeline_mode<synchronous>, transform_indices = @transform_6, window_bounds = array<i64: 8, 1>}, {pipeline_mode = #tpu.pipeline_mode<synchronous>, transform_indices = @transform_7, window_bounds = array<i64: 1, 324>}, {transform_indices = @transform_8, window_bounds = array<i64: 1, 8, 324>}]} {
    %c0 = arith.constant 0 : index
    %c0_0 = arith.constant 0 : index
    %0 = vector.load %arg8[%c0, %c0_0] : memref<1x324xi32, #tpu.memory_space<vmem>>, vector<1x324xi32>
    %c0_i32 = arith.constant 0 : i32
    %1 = vector.broadcast %c0_i32 : i32 to vector<1x324xi32>
    %2 = arith.cmpi eq, %0, %1 : vector<1x324xi32>
    %c17_i32 = arith.constant 17 : i32
    %3 = vector.broadcast %c17_i32 : i32 to vector<1x324xi32>
    %4 = arith.cmpi eq, %0, %3 : vector<1x324xi32>
    %cst = arith.constant 0.000000e+00 : f32
    %5 = vector.broadcast %cst : f32 to vector<8x362xf32>
    %c0_1 = arith.constant 0 : index
    %c0_2 = arith.constant 0 : index
    %6 = vector.load %arg10[%c0_1, %c0_2] : memref<8x362xf32, #tpu.memory_space<vmem>>, vector<8x362xf32>
    tpu.vector_store %arg10[%c0_1, %c0_2], %5 {strides = array<i32>} : memref<8x362xf32, #tpu.memory_space<vmem>>, vector<8x362xf32>,
    %c0_3 = arith.constant 0 : index
    %c0_4 = arith.constant 0 : index
    %c0_5 = arith.constant 0 : index
    %7 = vector.load %arg1[%c0_3, %c0_4, %c0_5] : memref<1x4x324xf32, #tpu.memory_space<vmem>>, vector<1x4x324xf32>
    %8 = vector.shape_cast %7 : vector<1x4x324xf32> to vector<4x324xf32>
    %c0_6 = arith.constant 0 : index
    %c19 = arith.constant 19 : index
    %9 = vector.load %arg10[%c0_6, %c19] : memref<8x362xf32, #tpu.memory_space<vmem>>, vector<4x324xf32>
    tpu.vector_store %arg10[%c0_6, %c19], %8 {strides = array<i32>} : memref<8x362xf32, #tpu.memory_space<vmem>>, vector<4x324xf32>,
    %c0_7 = arith.constant 0 : index
    %c0_8 = arith.constant 0 : index
    %10 = vector.load %arg10[%c0_7, %c0_8] : memref<8x362xf32, #tpu.memory_space<vmem>>, vector<4x324xf32>
    %11 = arith.truncf %10 : vector<4x324xf32> to vector<4x324xbf16>
    %c0_9 = arith.constant 0 : index
    %c0_10 = arith.constant 0 : index
    %12 = vector.load %arg11[%c0_9, %c0_10] : memref<72x324xbf16, #tpu.memory_space<vmem>>, vector<4x324xbf16>
    tpu.vector_store %arg11[%c0_9, %c0_10], %11 {strides = array<i32>} : memref<72x324xbf16, #tpu.memory_space<vmem>>, vector<4x324xbf16>,
    %c0_11 = arith.constant 0 : index
    %c1 = arith.constant 1 : index
    %13 = vector.load %arg10[%c0_11, %c1] : memref<8x362xf32, #tpu.memory_space<vmem>>, vector<4x324xf32>
    %14 = arith.truncf %13 : vector<4x324xf32> to vector<4x324xbf16>
    %c4 = arith.constant 4 : index
    %c0_12 = arith.constant 0 : index
    %15 = vector.load %arg11[%c4, %c0_12] : memref<72x324xbf16, #tpu.memory_space<vmem>>, vector<4x324xbf16>
    tpu.vector_store %arg11[%c4, %c0_12], %14 {strides = array<i32>} : memref<72x324xbf16, #tpu.memory_space<vmem>>, vector<4x324xbf16>,
    %c0_13 = arith.constant 0 : index
    %c2 = arith.constant 2 : index
    %16 = vector.load %arg10[%c0_13, %c2] : memref<8x362xf32, #tpu.memory_space<vmem>>, vector<4x324xf32>
    %17 = arith.truncf %16 : vector<4x324xf32> to vector<4x324xbf16>
    %c8 = arith.constant 8 : index
    %c0_14 = arith.constant 0 : index
    %18 = vector.load %arg11[%c8, %c0_14] : memref<72x324xbf16, #tpu.memory_space<vmem>>, vector<4x324xbf16>
    tpu.vector_store %arg11[%c8, %c0_14], %17 {strides = array<i32>} : memref<72x324xbf16, #tpu.memory_space<vmem>>, vector<4x324xbf16>,
    %c0_15 = arith.constant 0 : index
    %c18 = arith.constant 18 : index
    %19 = vector.load %arg10[%c0_15, %c18] : memref<8x362xf32, #tpu.memory_space<vmem>>, vector<4x324xf32>
    %20 = arith.truncf %19 : vector<4x324xf32> to vector<4x324xbf16>
    %c12 = arith.constant 12 : index
    %c0_16 = arith.constant 0 : index
    %21 = vector.load %arg11[%c12, %c0_16] : memref<72x324xbf16, #tpu.memory_space<vmem>>, vector<4x324xbf16>
    tpu.vector_store %arg11[%c12, %c0_16], %20 {strides = array<i32>} : memref<72x324xbf16, #tpu.memory_space<vmem>>, vector<4x324xbf16>,
    %c0_17 = arith.constant 0 : index
    %c19_18 = arith.constant 19 : index
    %22 = vector.load %arg10[%c0_17, %c19_18] : memref<8x362xf32, #tpu.memory_space<vmem>>, vector<4x324xf32>
    %23 = arith.truncf %22 : vector<4x324xf32> to vector<4x324xbf16>
    %c16 = arith.constant 16 : index
    %c0_19 = arith.constant 0 : index
    %24 = vector.load %arg11[%c16, %c0_19] : memref<72x324xbf16, #tpu.memory_space<vmem>>, vector<4x324xbf16>
    tpu.vector_store %arg11[%c16, %c0_19], %23 {strides = array<i32>} : memref<72x324xbf16, #tpu.memory_space<vmem>>, vector<4x324xbf16>,
    %c0_20 = arith.constant 0 : index
    %c20 = arith.constant 20 : index
    %25 = vector.load %arg10[%c0_20, %c20] : memref<8x362xf32, #tpu.memory_space<vmem>>, vector<4x324xf32>
    %26 = arith.truncf %25 : vector<4x324xf32> to vector<4x324xbf16>
    %c20_21 = arith.constant 20 : index
    %c0_22 = arith.constant 0 : index
    %27 = vector.load %arg11[%c20_21, %c0_22] : memref<72x324xbf16, #tpu.memory_space<vmem>>, vector<4x324xbf16>
    tpu.vector_store %arg11[%c20_21, %c0_22], %26 {strides = array<i32>} : memref<72x324xbf16, #tpu.memory_space<vmem>>, vector<4x324xbf16>,
    %c0_23 = arith.constant 0 : index
    %c36 = arith.constant 36 : index
    %28 = vector.load %arg10[%c0_23, %c36] : memref<8x362xf32, #tpu.memory_space<vmem>>, vector<4x324xf32>
    %29 = arith.truncf %28 : vector<4x324xf32> to vector<4x324xbf16>
    %c24 = arith.constant 24 : index
    %c0_24 = arith.constant 0 : index
    %30 = vector.load %arg11[%c24, %c0_24] : memref<72x324xbf16, #tpu.memory_space<vmem>>, vector<4x324xbf16>
    tpu.vector_store %arg11[%c24, %c0_24], %29 {strides = array<i32>} : memref<72x324xbf16, #tpu.memory_space<vmem>>, vector<4x324xbf16>,
    %c0_25 = arith.constant 0 : index
    %c37 = arith.constant 37 : index
    %31 = vector.load %arg10[%c0_25, %c37] : memref<8x362xf32, #tpu.memory_space<vmem>>, vector<4x324xf32>
    %32 = arith.truncf %31 : vector<4x324xf32> to vector<4x324xbf16>
    %c28 = arith.constant 28 : index
    %c0_26 = arith.constant 0 : index
    %33 = vector.load %arg11[%c28, %c0_26] : memref<72x324xbf16, #tpu.memory_space<vmem>>, vector<4x324xbf16>
    tpu.vector_store %arg11[%c28, %c0_26], %32 {strides = array<i32>} : memref<72x324xbf16, #tpu.memory_space<vmem>>, vector<4x324xbf16>,
    %c0_27 = arith.constant 0 : index
    %c38 = arith.constant 38 : index
    %34 = vector.load %arg10[%c0_27, %c38] : memref<8x362xf32, #tpu.memory_space<vmem>>, vector<4x324xf32>
    %35 = arith.truncf %34 : vector<4x324xf32> to vector<4x324xbf16>
    %c32 = arith.constant 32 : index
    %c0_28 = arith.constant 0 : index
    %36 = vector.load %arg11[%c32, %c0_28] : memref<72x324xbf16, #tpu.memory_space<vmem>>, vector<4x324xbf16>
    tpu.vector_store %arg11[%c32, %c0_28], %35 {strides = array<i32>} : memref<72x324xbf16, #tpu.memory_space<vmem>>, vector<4x324xbf16>,
    %c0_29 = arith.constant 0 : index
    %c0_30 = arith.constant 0 : index
    %37 = vector.load %arg2[%c0_29, %c0_30] : memref<8x36xbf16, #tpu.memory_space<vmem>>, vector<8x36xbf16>
    %c0_31 = arith.constant 0 : index
    %c0_32 = arith.constant 0 : index
    %38 = vector.load %arg11[%c0_31, %c0_32] : memref<72x324xbf16, #tpu.memory_space<vmem>>, vector<36x324xbf16>
    %cst_33 = arith.constant dense<0.000000e+00> : vector<8x324xf32>
    %39 = tpu.matmul %37, %38, %cst_33 {dimension_numbers = #tpu.dot_dimension_numbers<[1], [0], [0], [1], [0, 0, 1, 1], [], []>} : vector<8x36xbf16>, vector<36x324xbf16>, vector<8x324xf32> -> vector<8x324xf32>
    %c0_34 = arith.constant 0 : index
    %c0_35 = arith.constant 0 : index
    %40 = vector.load %arg3[%c0_34, %c0_35] : memref<8x1xf32, #tpu.memory_space<vmem>>, vector<8x1xf32>
    %41 = vector.broadcast %40 : vector<8x1xf32> to vector<8x324xf32>
    %42 = arith.addf %39, %41 : vector<8x324xf32>
    %cst_36 = arith.constant 2.000000e-01 : f32
    %43 = vector.broadcast %cst_36 : f32 to vector<8x324xf32>
    %44 = arith.mulf %43, %42 : vector<8x324xf32>
    %45 = arith.maximumf %42, %44 : vector<8x324xf32>
    %c0_37 = arith.constant 0 : index
    %c19_38 = arith.constant 19 : index
    %46 = vector.load %arg10[%c0_37, %c19_38] : memref<8x362xf32, #tpu.memory_space<vmem>>, vector<8x324xf32>
    tpu.vector_store %arg10[%c0_37, %c19_38], %45 {strides = array<i32>} : memref<8x362xf32, #tpu.memory_space<vmem>>, vector<8x324xf32>,
    %c0_39 = arith.constant 0 : index
    %c55 = arith.constant 55 : index
    %47 = vector.load %arg10[%c0_39, %c55] : memref<8x362xf32, #tpu.memory_space<vmem>>, vector<8x18xf32>
    %c0_40 = arith.constant 0 : index
    %c19_41 = arith.constant 19 : index
    %48 = vector.load %arg10[%c0_40, %c19_41] : memref<8x362xf32, #tpu.memory_space<vmem>>, vector<8x18xf32>
    tpu.vector_store %arg10[%c0_40, %c19_41], %47 {strides = array<i32>} : memref<8x362xf32, #tpu.memory_space<vmem>>, vector<8x18xf32>,
    %c0_42 = arith.constant 0 : index
    %c289 = arith.constant 289 : index
    %49 = vector.load %arg10[%c0_42, %c289] : memref<8x362xf32, #tpu.memory_space<vmem>>, vector<8x18xf32>
    %c0_43 = arith.constant 0 : index
    %c325 = arith.constant 325 : index
    %50 = vector.load %arg10[%c0_43, %c325] : memref<8x362xf32, #tpu.memory_space<vmem>>, vector<8x18xf32>
    tpu.vector_store %arg10[%c0_43, %c325], %49 {strides = array<i32>} : memref<8x362xf32, #tpu.memory_space<vmem>>, vector<8x18xf32>,
    %c0_44 = arith.constant 0 : index
    %c19_45 = arith.constant 19 : index
    %51 = vector.load %arg10[%c0_44, %c19_45] : memref<8x362xf32, #tpu.memory_space<vmem>>, vector<8x324xf32>
    %c0_46 = arith.constant 0 : index
    %c21 = arith.constant 21 : index
    %52 = vector.load %arg10[%c0_46, %c21] : memref<8x362xf32, #tpu.memory_space<vmem>>, vector<8x324xf32>
    %c0_47 = arith.constant 0 : index
    %c17 = arith.constant 17 : index
    %53 = vector.load %arg10[%c0_47, %c17] : memref<8x362xf32, #tpu.memory_space<vmem>>, vector<8x324xf32>
    %54 = vector.shape_cast %4 : vector<1x324xi1> to vector<1x324xi1>
    %55 = vector.broadcast %54 : vector<1x324xi1> to vector<8x324xi1>
    %56 = arith.select %55, %53, %51 : vector<8x324xi1>, vector<8x324xf32>
    %57 = vector.shape_cast %2 : vector<1x324xi1> to vector<1x324xi1>
    %58 = vector.broadcast %57 : vector<1x324xi1> to vector<8x324xi1>
    %59 = arith.select %58, %52, %56 : vector<8x324xi1>, vector<8x324xf32>
    %c0_48 = arith.constant 0 : index
    %c19_49 = arith.constant 19 : index
    %60 = vector.load %arg10[%c0_48, %c19_49] : memref<8x362xf32, #tpu.memory_space<vmem>>, vector<8x324xf32>
    tpu.vector_store %arg10[%c0_48, %c19_49], %59 {strides = array<i32>} : memref<8x362xf32, #tpu.memory_space<vmem>>, vector<8x324xf32>,
    %c0_50 = arith.constant 0 : index
    %c0_51 = arith.constant 0 : index
    %61 = vector.load %arg10[%c0_50, %c0_51] : memref<8x362xf32, #tpu.memory_space<vmem>>, vector<8x324xf32>
    %62 = arith.truncf %61 : vector<8x324xf32> to vector<8x324xbf16>
    %c0_52 = arith.constant 0 : index
    %c0_53 = arith.constant 0 : index
    %63 = vector.load %arg11[%c0_52, %c0_53] : memref<72x324xbf16, #tpu.memory_space<vmem>>, vector<8x324xbf16>
    tpu.vector_store %arg11[%c0_52, %c0_53], %62 {strides = array<i32>} : memref<72x324xbf16, #tpu.memory_space<vmem>>, vector<8x324xbf16>,
    %c0_54 = arith.constant 0 : index
    %c1_55 = arith.constant 1 : index
    %64 = vector.load %arg10[%c0_54, %c1_55] : memref<8x362xf32, #tpu.memory_space<vmem>>, vector<8x324xf32>
    %65 = arith.truncf %64 : vector<8x324xf32> to vector<8x324xbf16>
    %c8_56 = arith.constant 8 : index
    %c0_57 = arith.constant 0 : index
    %66 = vector.load %arg11[%c8_56, %c0_57] : memref<72x324xbf16, #tpu.memory_space<vmem>>, vector<8x324xbf16>
    tpu.vector_store %arg11[%c8_56, %c0_57], %65 {strides = array<i32>} : memref<72x324xbf16, #tpu.memory_space<vmem>>, vector<8x324xbf16>,
    %c0_58 = arith.constant 0 : index
    %c2_59 = arith.constant 2 : index
    %67 = vector.load %arg10[%c0_58, %c2_59] : memref<8x362xf32, #tpu.memory_space<vmem>>, vector<8x324xf32>
    %68 = arith.truncf %67 : vector<8x324xf32> to vector<8x324xbf16>
    %c16_60 = arith.constant 16 : index
    %c0_61 = arith.constant 0 : index
    %69 = vector.load %arg11[%c16_60, %c0_61] : memref<72x324xbf16, #tpu.memory_space<vmem>>, vector<8x324xbf16>
    tpu.vector_store %arg11[%c16_60, %c0_61], %68 {strides = array<i32>} : memref<72x324xbf16, #tpu.memory_space<vmem>>, vector<8x324xbf16>,
    %c0_62 = arith.constant 0 : index
    %c18_63 = arith.constant 18 : index
    %70 = vector.load %arg10[%c0_62, %c18_63] : memref<8x362xf32, #tpu.memory_space<vmem>>, vector<8x324xf32>
    %71 = arith.truncf %70 : vector<8x324xf32> to vector<8x324xbf16>
    %c24_64 = arith.constant 24 : index
    %c0_65 = arith.constant 0 : index
    %72 = vector.load %arg11[%c24_64, %c0_65] : memref<72x324xbf16, #tpu.memory_space<vmem>>, vector<8x324xbf16>
    tpu.vector_store %arg11[%c24_64, %c0_65], %71 {strides = array<i32>} : memref<72x324xbf16, #tpu.memory_space<vmem>>, vector<8x324xbf16>,
    %c0_66 = arith.constant 0 : index
    %c19_67 = arith.constant 19 : index
    %73 = vector.load %arg10[%c0_66, %c19_67] : memref<8x362xf32, #tpu.memory_space<vmem>>, vector<8x324xf32>
    %74 = arith.truncf %73 : vector<8x324xf32> to vector<8x324xbf16>
    %c32_68 = arith.constant 32 : index
    %c0_69 = arith.constant 0 : index
    %75 = vector.load %arg11[%c32_68, %c0_69] : memref<72x324xbf16, #tpu.memory_space<vmem>>, vector<8x324xbf16>
    tpu.vector_store %arg11[%c32_68, %c0_69], %74 {strides = array<i32>} : memref<72x324xbf16, #tpu.memory_space<vmem>>, vector<8x324xbf16>,
    %c0_70 = arith.constant 0 : index
    %c20_71 = arith.constant 20 : index
    %76 = vector.load %arg10[%c0_70, %c20_71] : memref<8x362xf32, #tpu.memory_space<vmem>>, vector<8x324xf32>
    %77 = arith.truncf %76 : vector<8x324xf32> to vector<8x324xbf16>
    %c40 = arith.constant 40 : index
    %c0_72 = arith.constant 0 : index
    %78 = vector.load %arg11[%c40, %c0_72] : memref<72x324xbf16, #tpu.memory_space<vmem>>, vector<8x324xbf16>
    tpu.vector_store %arg11[%c40, %c0_72], %77 {strides = array<i32>} : memref<72x324xbf16, #tpu.memory_space<vmem>>, vector<8x324xbf16>,
    %c0_73 = arith.constant 0 : index
    %c36_74 = arith.constant 36 : index
    %79 = vector.load %arg10[%c0_73, %c36_74] : memref<8x362xf32, #tpu.memory_space<vmem>>, vector<8x324xf32>
    %80 = arith.truncf %79 : vector<8x324xf32> to vector<8x324xbf16>
    %c48 = arith.constant 48 : index
    %c0_75 = arith.constant 0 : index
    %81 = vector.load %arg11[%c48, %c0_75] : memref<72x324xbf16, #tpu.memory_space<vmem>>, vector<8x324xbf16>
    tpu.vector_store %arg11[%c48, %c0_75], %80 {strides = array<i32>} : memref<72x324xbf16, #tpu.memory_space<vmem>>, vector<8x324xbf16>,
    %c0_76 = arith.constant 0 : index
    %c37_77 = arith.constant 37 : index
    %82 = vector.load %arg10[%c0_76, %c37_77] : memref<8x362xf32, #tpu.memory_space<vmem>>, vector<8x324xf32>
    %83 = arith.truncf %82 : vector<8x324xf32> to vector<8x324xbf16>
    %c56 = arith.constant 56 : index
    %c0_78 = arith.constant 0 : index
    %84 = vector.load %arg11[%c56, %c0_78] : memref<72x324xbf16, #tpu.memory_space<vmem>>, vector<8x324xbf16>
    tpu.vector_store %arg11[%c56, %c0_78], %83 {strides = array<i32>} : memref<72x324xbf16, #tpu.memory_space<vmem>>, vector<8x324xbf16>,
    %c0_79 = arith.constant 0 : index
    %c38_80 = arith.constant 38 : index
    %85 = vector.load %arg10[%c0_79, %c38_80] : memref<8x362xf32, #tpu.memory_space<vmem>>, vector<8x324xf32>
    %86 = arith.truncf %85 : vector<8x324xf32> to vector<8x324xbf16>
    %c64 = arith.constant 64 : index
    %c0_81 = arith.constant 0 : index
    %87 = vector.load %arg11[%c64, %c0_81] : memref<72x324xbf16, #tpu.memory_space<vmem>>, vector<8x324xbf16>
    tpu.vector_store %arg11[%c64, %c0_81], %86 {strides = array<i32>} : memref<72x324xbf16, #tpu.memory_space<vmem>>, vector<8x324xbf16>,
    %c0_82 = arith.constant 0 : index
    %c0_83 = arith.constant 0 : index
    %88 = vector.load %arg4[%c0_82, %c0_83] : memref<8x72xbf16, #tpu.memory_space<vmem>>, vector<8x72xbf16>
    %c0_84 = arith.constant 0 : index
    %c0_85 = arith.constant 0 : index
    %89 = vector.load %arg11[%c0_84, %c0_85] : memref<72x324xbf16, #tpu.memory_space<vmem>>, vector<72x324xbf16>
    %cst_86 = arith.constant dense<0.000000e+00> : vector<8x324xf32>
    %90 = tpu.matmul %88, %89, %cst_86 {dimension_numbers = #tpu.dot_dimension_numbers<[1], [0], [0], [1], [0, 0, 1, 1], [], []>} : vector<8x72xbf16>, vector<72x324xbf16>, vector<8x324xf32> -> vector<8x324xf32>
    %c0_87 = arith.constant 0 : index
    %c0_88 = arith.constant 0 : index
    %91 = vector.load %arg5[%c0_87, %c0_88] : memref<8x1xf32, #tpu.memory_space<vmem>>, vector<8x1xf32>
    %92 = vector.broadcast %91 : vector<8x1xf32> to vector<8x324xf32>
    %93 = arith.addf %90, %92 : vector<8x324xf32>
    %cst_89 = arith.constant 2.000000e-01 : f32
    %94 = vector.broadcast %cst_89 : f32 to vector<8x324xf32>
    %95 = arith.mulf %94, %93 : vector<8x324xf32>
    %96 = arith.maximumf %93, %95 : vector<8x324xf32>
    %c0_90 = arith.constant 0 : index
    %c19_91 = arith.constant 19 : index
    %97 = vector.load %arg10[%c0_90, %c19_91] : memref<8x362xf32, #tpu.memory_space<vmem>>, vector<8x324xf32>
    tpu.vector_store %arg10[%c0_90, %c19_91], %96 {strides = array<i32>} : memref<8x362xf32, #tpu.memory_space<vmem>>, vector<8x324xf32>,
    %c0_92 = arith.constant 0 : index
    %c55_93 = arith.constant 55 : index
    %98 = vector.load %arg10[%c0_92, %c55_93] : memref<8x362xf32, #tpu.memory_space<vmem>>, vector<8x18xf32>
    %c0_94 = arith.constant 0 : index
    %c19_95 = arith.constant 19 : index
    %99 = vector.load %arg10[%c0_94, %c19_95] : memref<8x362xf32, #tpu.memory_space<vmem>>, vector<8x18xf32>
    tpu.vector_store %arg10[%c0_94, %c19_95], %98 {strides = array<i32>} : memref<8x362xf32, #tpu.memory_space<vmem>>, vector<8x18xf32>,
    %c0_96 = arith.constant 0 : index
    %c289_97 = arith.constant 289 : index
    %100 = vector.load %arg10[%c0_96, %c289_97] : memref<8x362xf32, #tpu.memory_space<vmem>>, vector<8x18xf32>
    %c0_98 = arith.constant 0 : index
    %c325_99 = arith.constant 325 : index
    %101 = vector.load %arg10[%c0_98, %c325_99] : memref<8x362xf32, #tpu.memory_space<vmem>>, vector<8x18xf32>
    tpu.vector_store %arg10[%c0_98, %c325_99], %100 {strides = array<i32>} : memref<8x362xf32, #tpu.memory_space<vmem>>, vector<8x18xf32>,
    %c0_100 = arith.constant 0 : index
    %c19_101 = arith.constant 19 : index
    %102 = vector.load %arg10[%c0_100, %c19_101] : memref<8x362xf32, #tpu.memory_space<vmem>>, vector<8x324xf32>
    %c0_102 = arith.constant 0 : index
    %c21_103 = arith.constant 21 : index
    %103 = vector.load %arg10[%c0_102, %c21_103] : memref<8x362xf32, #tpu.memory_space<vmem>>, vector<8x324xf32>
    %c0_104 = arith.constant 0 : index
    %c17_105 = arith.constant 17 : index
    %104 = vector.load %arg10[%c0_104, %c17_105] : memref<8x362xf32, #tpu.memory_space<vmem>>, vector<8x324xf32>
    %105 = vector.shape_cast %4 : vector<1x324xi1> to vector<1x324xi1>
    %106 = vector.broadcast %105 : vector<1x324xi1> to vector<8x324xi1>
    %107 = arith.select %106, %104, %102 : vector<8x324xi1>, vector<8x324xf32>
    %108 = vector.shape_cast %2 : vector<1x324xi1> to vector<1x324xi1>
    %109 = vector.broadcast %108 : vector<1x324xi1> to vector<8x324xi1>
    %110 = arith.select %109, %103, %107 : vector<8x324xi1>, vector<8x324xf32>
    %c0_106 = arith.constant 0 : index
    %c19_107 = arith.constant 19 : index
    %111 = vector.load %arg10[%c0_106, %c19_107] : memref<8x362xf32, #tpu.memory_space<vmem>>, vector<8x324xf32>
    tpu.vector_store %arg10[%c0_106, %c19_107], %110 {strides = array<i32>} : memref<8x362xf32, #tpu.memory_space<vmem>>, vector<8x324xf32>,
    %c0_108 = arith.constant 0 : index
    %c0_109 = arith.constant 0 : index
    %112 = vector.load %arg10[%c0_108, %c0_109] : memref<8x362xf32, #tpu.memory_space<vmem>>, vector<8x324xf32>
    %113 = arith.truncf %112 : vector<8x324xf32> to vector<8x324xbf16>
    %c0_110 = arith.constant 0 : index
    %c0_111 = arith.constant 0 : index
    %114 = vector.load %arg11[%c0_110, %c0_111] : memref<72x324xbf16, #tpu.memory_space<vmem>>, vector<8x324xbf16>
    tpu.vector_store %arg11[%c0_110, %c0_111], %113 {strides = array<i32>} : memref<72x324xbf16, #tpu.memory_space<vmem>>, vector<8x324xbf16>,
    %c0_112 = arith.constant 0 : index
    %c1_113 = arith.constant 1 : index
    %115 = vector.load %arg10[%c0_112, %c1_113] : memref<8x362xf32, #tpu.memory_space<vmem>>, vector<8x324xf32>
    %116 = arith.truncf %115 : vector<8x324xf32> to vector<8x324xbf16>
    %c8_114 = arith.constant 8 : index
    %c0_115 = arith.constant 0 : index
    %117 = vector.load %arg11[%c8_114, %c0_115] : memref<72x324xbf16, #tpu.memory_space<vmem>>, vector<8x324xbf16>
    tpu.vector_store %arg11[%c8_114, %c0_115], %116 {strides = array<i32>} : memref<72x324xbf16, #tpu.memory_space<vmem>>, vector<8x324xbf16>,
    %c0_116 = arith.constant 0 : index
    %c2_117 = arith.constant 2 : index
    %118 = vector.load %arg10[%c0_116, %c2_117] : memref<8x362xf32, #tpu.memory_space<vmem>>, vector<8x324xf32>
    %119 = arith.truncf %118 : vector<8x324xf32> to vector<8x324xbf16>
    %c16_118 = arith.constant 16 : index
    %c0_119 = arith.constant 0 : index
    %120 = vector.load %arg11[%c16_118, %c0_119] : memref<72x324xbf16, #tpu.memory_space<vmem>>, vector<8x324xbf16>
    tpu.vector_store %arg11[%c16_118, %c0_119], %119 {strides = array<i32>} : memref<72x324xbf16, #tpu.memory_space<vmem>>, vector<8x324xbf16>,
    %c0_120 = arith.constant 0 : index
    %c18_121 = arith.constant 18 : index
    %121 = vector.load %arg10[%c0_120, %c18_121] : memref<8x362xf32, #tpu.memory_space<vmem>>, vector<8x324xf32>
    %122 = arith.truncf %121 : vector<8x324xf32> to vector<8x324xbf16>
    %c24_122 = arith.constant 24 : index
    %c0_123 = arith.constant 0 : index
    %123 = vector.load %arg11[%c24_122, %c0_123] : memref<72x324xbf16, #tpu.memory_space<vmem>>, vector<8x324xbf16>
    tpu.vector_store %arg11[%c24_122, %c0_123], %122 {strides = array<i32>} : memref<72x324xbf16, #tpu.memory_space<vmem>>, vector<8x324xbf16>,
    %c0_124 = arith.constant 0 : index
    %c19_125 = arith.constant 19 : index
    %124 = vector.load %arg10[%c0_124, %c19_125] : memref<8x362xf32, #tpu.memory_space<vmem>>, vector<8x324xf32>
    %125 = arith.truncf %124 : vector<8x324xf32> to vector<8x324xbf16>
    %c32_126 = arith.constant 32 : index
    %c0_127 = arith.constant 0 : index
    %126 = vector.load %arg11[%c32_126, %c0_127] : memref<72x324xbf16, #tpu.memory_space<vmem>>, vector<8x324xbf16>
    tpu.vector_store %arg11[%c32_126, %c0_127], %125 {strides = array<i32>} : memref<72x324xbf16, #tpu.memory_space<vmem>>, vector<8x324xbf16>,
    %c0_128 = arith.constant 0 : index
    %c20_129 = arith.constant 20 : index
    %127 = vector.load %arg10[%c0_128, %c20_129] : memref<8x362xf32, #tpu.memory_space<vmem>>, vector<8x324xf32>
    %128 = arith.truncf %127 : vector<8x324xf32> to vector<8x324xbf16>
    %c40_130 = arith.constant 40 : index
    %c0_131 = arith.constant 0 : index
    %129 = vector.load %arg11[%c40_130, %c0_131] : memref<72x324xbf16, #tpu.memory_space<vmem>>, vector<8x324xbf16>
    tpu.vector_store %arg11[%c40_130, %c0_131], %128 {strides = array<i32>} : memref<72x324xbf16, #tpu.memory_space<vmem>>, vector<8x324xbf16>,
    %c0_132 = arith.constant 0 : index
    %c36_133 = arith.constant 36 : index
    %130 = vector.load %arg10[%c0_132, %c36_133] : memref<8x362xf32, #tpu.memory_space<vmem>>, vector<8x324xf32>
    %131 = arith.truncf %130 : vector<8x324xf32> to vector<8x324xbf16>
    %c48_134 = arith.constant 48 : index
    %c0_135 = arith.constant 0 : index
    %132 = vector.load %arg11[%c48_134, %c0_135] : memref<72x324xbf16, #tpu.memory_space<vmem>>, vector<8x324xbf16>
    tpu.vector_store %arg11[%c48_134, %c0_135], %131 {strides = array<i32>} : memref<72x324xbf16, #tpu.memory_space<vmem>>, vector<8x324xbf16>,
    %c0_136 = arith.constant 0 : index
    %c37_137 = arith.constant 37 : index
    %133 = vector.load %arg10[%c0_136, %c37_137] : memref<8x362xf32, #tpu.memory_space<vmem>>, vector<8x324xf32>
    %134 = arith.truncf %133 : vector<8x324xf32> to vector<8x324xbf16>
    %c56_138 = arith.constant 56 : index
    %c0_139 = arith.constant 0 : index
    %135 = vector.load %arg11[%c56_138, %c0_139] : memref<72x324xbf16, #tpu.memory_space<vmem>>, vector<8x324xbf16>
    tpu.vector_store %arg11[%c56_138, %c0_139], %134 {strides = array<i32>} : memref<72x324xbf16, #tpu.memory_space<vmem>>, vector<8x324xbf16>,
    %c0_140 = arith.constant 0 : index
    %c38_141 = arith.constant 38 : index
    %136 = vector.load %arg10[%c0_140, %c38_141] : memref<8x362xf32, #tpu.memory_space<vmem>>, vector<8x324xf32>
    %137 = arith.truncf %136 : vector<8x324xf32> to vector<8x324xbf16>
    %c64_142 = arith.constant 64 : index
    %c0_143 = arith.constant 0 : index
    %138 = vector.load %arg11[%c64_142, %c0_143] : memref<72x324xbf16, #tpu.memory_space<vmem>>, vector<8x324xbf16>
    tpu.vector_store %arg11[%c64_142, %c0_143], %137 {strides = array<i32>} : memref<72x324xbf16, #tpu.memory_space<vmem>>, vector<8x324xbf16>,
    %c0_144 = arith.constant 0 : index
    %c0_145 = arith.constant 0 : index
    %139 = vector.load %arg6[%c0_144, %c0_145] : memref<8x72xbf16, #tpu.memory_space<vmem>>, vector<8x72xbf16>
    %c0_146 = arith.constant 0 : index
    %c0_147 = arith.constant 0 : index
    %140 = vector.load %arg11[%c0_146, %c0_147] : memref<72x324xbf16, #tpu.memory_space<vmem>>, vector<72x324xbf16>
    %cst_148 = arith.constant dense<0.000000e+00> : vector<8x324xf32>
    %141 = tpu.matmul %139, %140, %cst_148 {dimension_numbers = #tpu.dot_dimension_numbers<[1], [0], [0], [1], [0, 0, 1, 1], [], []>} : vector<8x72xbf16>, vector<72x324xbf16>, vector<8x324xf32> -> vector<8x324xf32>
    %c0_149 = arith.constant 0 : index
    %c0_150 = arith.constant 0 : index
    %142 = vector.load %arg7[%c0_149, %c0_150] : memref<8x1xf32, #tpu.memory_space<vmem>>, vector<8x1xf32>
    %143 = vector.broadcast %142 : vector<8x1xf32> to vector<8x324xf32>
    %144 = arith.addf %141, %143 : vector<8x324xf32>
    %cst_151 = arith.constant 2.000000e-01 : f32
    %145 = vector.broadcast %cst_151 : f32 to vector<8x324xf32>
    %146 = arith.mulf %145, %144 : vector<8x324xf32>
    %147 = arith.maximumf %144, %146 : vector<8x324xf32>
    %148 = arith.addf %147, %45 : vector<8x324xf32>
    %c0_152 = arith.constant 0 : index
    %c0_153 = arith.constant 0 : index
    %c0_154 = arith.constant 0 : index
    %149 = vector.load %arg9[%c0_152, %c0_153, %c0_154] : memref<1x8x324xf32, #tpu.memory_space<vmem>>, vector<1x8x324xf32>
    %150 = vector.shape_cast %149 : vector<1x8x324xf32> to vector<8x324xf32>
    %151 = vector.shape_cast %148 : vector<8x324xf32> to vector<1x8x324xf32>
    tpu.vector_store %arg9[%c0_152, %c0_153, %c0_154], %151 {strides = array<i32>} : memref<1x8x324xf32, #tpu.memory_space<vmem>>, vector<1x8x324xf32>,
    return
  }
  func.func @transform_0(%arg0: i32) -> (i32, i32, i32) {
    %c0_i32 = arith.constant 0 : i32
    %c0_i32_0 = arith.constant 0 : i32
    %c0_i32_1 = arith.constant 0 : i32
    return %arg0, %c0_i32, %c0_i32_0 : i32, i32, i32
  }
  func.func @transform_1(%arg0: i32) -> (i32, i32) {
    %c0_i32 = arith.constant 0 : i32
    %c0_i32_0 = arith.constant 0 : i32
    %c0_i32_1 = arith.constant 0 : i32
    return %c0_i32, %c0_i32_0 : i32, i32
  }
  func.func @transform_2(%arg0: i32) -> (i32, i32) {
    %c0_i32 = arith.constant 0 : i32
    %c0_i32_0 = arith.constant 0 : i32
    %c0_i32_1 = arith.constant 0 : i32
    return %c0_i32, %c0_i32_0 : i32, i32
  }
  func.func @transform_3(%arg0: i32) -> (i32, i32) {
    %c0_i32 = arith.constant 0 : i32
    %c0_i32_0 = arith.constant 0 : i32
    %c0_i32_1 = arith.constant 0 : i32
    return %c0_i32, %c0_i32_0 : i32, i32
  }
  func.func @transform_4(%arg0: i32) -> (i32, i32) {
    %c0_i32 = arith.constant 0 : i32
    %c0_i32_0 = arith.constant 0 : i32
    %c0_i32_1 = arith.constant 0 : i32
    return %c0_i32, %c0_i32_0 : i32, i32
  }
  func.func @transform_5(%arg0: i32) -> (i32, i32) {
    %c0_i32 = arith.constant 0 : i32
    %c0_i32_0 = arith.constant 0 : i32
    %c0_i32_1 = arith.constant 0 : i32
    return %c0_i32, %c0_i32_0 : i32, i32
  }
  func.func @transform_6(%arg0: i32) -> (i32, i32) {
    %c0_i32 = arith.constant 0 : i32
    %c0_i32_0 = arith.constant 0 : i32
    %c0_i32_1 = arith.constant 0 : i32
    return %c0_i32, %c0_i32_0 : i32, i32
  }
  func.func @transform_7(%arg0: i32) -> (i32, i32) {
    %c0_i32 = arith.constant 0 : i32
    %c0_i32_0 = arith.constant 0 : i32
    %c0_i32_1 = arith.constant 0 : i32
    return %c0_i32, %c0_i32_0 : i32, i32
  }
  func.func @transform_8(%arg0: i32) -> (i32, i32, i32) {
    %c0_i32 = arith.constant 0 : i32
    %c0_i32_0 = arith.constant 0 : i32
    %c0_i32_1 = arith.constant 0 : i32
    return %arg0, %c0_i32, %c0_i32_0 : i32, i32, i32
  }
}

</mosaic_0001>

<bundles_post_ra>
// kernel: resblock_forward.1
= control target key start
LH: loop header
LB: loop body
LE: loop exit
PB: predicated region body
PF: predicated region fallthrough
CT: control target
= control target key end

     0   :  { %s2205_s27 = smov 0   ;;  %s2534_s0 = inlined_call_operand.vmem [shape: f32[2,4,324], index: 0, kind: input, shape index: {}]   ;;  %s2535_s1 = inlined_call_operand.vmem [shape: bf16[8,36], index: 1, kind: input, shape index: {}]   ;;  %s2536_s2 = inlined_call_operand.vmem [shape: f32[8,1], index: 2, kind: input, shape index: {}]   ;;  %s2537_s3 = inlined_call_operand.vmem [shape: bf16[8,72], index: 3, kind: input, shape index: {}]   ;;  %s2538_s4 = inlined_call_operand.vmem [shape: f32[8,1], index: 4, kind: input, shape index: {}]   ;;  %s2539_s5 = inlined_call_operand.vmem [shape: bf16[8,72], index: 5, kind: input, shape index: {}]   ;;  %s2540_s6 = inlined_call_operand.vmem [shape: f32[8,1], index: 6, kind: input, shape index: {}]   ;;  %s2541_s7 = inlined_call_operand.vmem [shape: s32[1,324], index: 7, kind: input, shape index: {}]   ;;  %s2542_s8 = inlined_call_operand.vmem [shape: f32[2,8,324], index: 8, kind: output, shape index: {}]  }
   0x1 LB: > { %s1869_s28 = sadd.s32 4294967295, %s2143_s27   ;;  %p1873_p0 = scmp.ge.s32.totalorder %s2143_s27, 1  ;;  %s2143_s27 = sphi %s2205_s27, %s18_s27  }
   0x2   : > { %p262_p1 = scmp.lt.s32.totalorder %s2143_s27, 3 }
   0x4   : > { %p263_p2 = pnand %p1873_p0, %p262_p1 }
   0x5   : > { %p296_p3 = scmp.lt.s32.totalorder (!%p263_p2), %s1869_s28, 1  ;;  %vm312_vm0 = vcmask (!%p263_p2), 867328   ;;  %v2145_v0 = vmov (!%p263_p2), 0.0   ;;  %s2146_s11 = smov (!%p263_p2), 19   ;;  %vm331_vm1 = vcmask (!%p263_p2), 1043608   ;;  %vm325_vm2 = vcmask (!%p263_p2), 154624  }
   0x6   : > { %266 = sbr.rel (%p263_p2) target bundleno = 2287 (0x8ef), region = 52  ;;  %310 = vst [vmem:[#allocation2] sm:$0xff] (!%p263_p2), %v2145_v0  ;;  %311 = vst [vmem:[#allocation2 + $0x8] sm:$0xff] (!%p263_p2), %v2145_v0  ;;  %2050 = vmatprep.subr.bf16.mxu1 (!%p263_p2), %v2145_v0  ;;  %vm334_vm3 = vcmask (!%p263_p2), 707584   ;;  %s2147_s12 = smov (!%p263_p2), 126   ;;  %vm353_vm4 = vcmask (!%p263_p2), 549888  }
   0x7   : > { %313 = vst.msk [vmem:[#allocation2 + $0x10] sm:$0xff] (!%p263_p2), %vm312_vm0, %v2145_v0  ;;  %s2148_s13 = smov (!%p263_p2), 109   ;;  %s2149_s14 = smov (!%p263_p2), 92   ;;  %vm2545_vm5 = vmmov (!%p263_p2), 0   ;;  %v2156_v62 = vmov (!%p263_p2), 0   ;;  %v592_v63 = vld [vmem:[%s2536_s2] sm:$0xff] (!%p263_p2) }
   0x8   : > { %s2150_s15 = smov (!%p263_p2), 127   ;;  %s2151_s16 = smov (!%p263_p2), 110   ;;  %2056 = vmatprep.mubr.msk.bf16.mxu1 (!%p263_p2), %vm2545_vm5, %v2145_v0  ;;  %684 = vmatprep.mubr.bf16.mxu0 (!%p263_p2), %v2156_v62  ;;  %vm377_vm6 = vcmask (!%p263_p2), 1043456   ;;  %vm2552_vm7 = vcmask (!%p263_p2), 1031168   ;;  %vm463_vm8 = vcmask (!%p263_p2), 891904   ;;  %vm2548_vm9 = vcmask (!%p263_p2), 752640  }
   0x9   : > { %s2152_s17 = smov (!%p263_p2), 108   ;;  %s2153_s18 = smov (!%p263_p2), 91   ;;  %2113 = vset.pattern.permute.xlu1 (!%p263_p2), %v2156_v62  ;;  %2114 = vset.pattern.permute.xlu0 (!%p263_p2), %v2156_v62  ;;  %vm384_vm10 = vcmask (!%p263_p2), 551938   ;;  %vm2553_vm11 = vcmask (!%p263_p2), 1039360   ;;  %vm2551_vm12 = vcmask (!%p263_p2), 900096   ;;  %vm2549_vm13 = vcmask (!%p263_p2), 883712  }
   0xa   : > { %s2154_s19 = smov (!%p263_p2), 90   ;;  %vm2547_vm14 = vcmask (!%p263_p2), 744448   ;;  %vm2546_vm15 = vcmask (!%p263_p2), 736256   ;;  %vm642_vm0 = vcmask (!%p263_p2), 1041408   ;;  %s2157_s24 = smov (!%p263_p2), 36  }
   0xb   : > { %s2158_s25 = smov (!%p263_p2), 111   ;;  %s2159_s26 = smov (!%p263_p2), 107  }
   0xd   : > { %s2570_s28 = smov (!%p296_p3, %s1869_s28), 1 }
   0xe   : > { %s2088_s29 = smul.u32 12, %s2570_s28 }
  0x10   : > { %s300_s10 = scalar_lea.vmem %s2534_s0, %s2088_s29 }
  0x11   : > { %v314_v1 = vld [vmem:[%s300_s10] sm:$0xff]  ;;  %v315_v2 = vld [vmem:[%s300_s10 + $0x8] sm:$0xf] }
  0x12   : > { %319 = vrot.lane.b32.xlu0 %v314_v1, %s2146_s11  ;;  %v318_v3 = vcombine.high %v314_v1, %v314_v1  ;;  %323 = vrot.lane.b32.xlu1 %v315_v2, %s2146_s11 }
  0x16   : > { %321 = vrot.lane.b32.xlu0 %v318_v3, %s2146_s11 }
  0x84   : > { %v320_v4 = vpop.permute.xlu0 %319  ;;  %v324_v5 = vpop.permute.xlu1 %323 }
  0x85   : > { %332 = vst.msk [vmem:[#allocation2] sm:$0xf] %vm331_vm1, %v320_v4  ;;  %vm638_vm1 = vcmask 293888  }
  0x88   : > { %v322_v6 = vpop.permute.xlu0 %321 }
  0x89   : > { %v326_v7 = vsel %vm325_vm2, %v320_v4, %v322_v6  ;;  %v327_v8 = vsel %vm325_vm2, %v322_v6, %v324_v5 }
  0x8a   : > { %333 = vst [vmem:[#allocation2 + $0x8] sm:$0xf] %v326_v7  ;;  %335 = vst.msk [vmem:[#allocation2 + $0x10] sm:$0xf] %vm334_vm3, %v327_v8  ;;  %vm756_vm3 = vcmask 711680  }
  0x8c   : > { %v336_v9 = vld [vmem:[#allocation2] sm:$0xf] }
  0x8d   : > { %v386_v10 = vld [vmem:[#allocation2] sm:$0xf] }
  0x8e   : > { %v442_v19 = vld [vmem:[#allocation2] sm:$0xf] }
  0x8f   : > { %v498_v27 = vld [vmem:[#allocation2] sm:$0xf] }
  0x90   : > { %v355_v28 = vld [vmem:[#allocation2] sm:$0xf] }
  0x91   : > { %v337_v11 = vld [vmem:[#allocation2 + $0x8] sm:$0xf]  ;;  %v388_v12 = vld [vmem:[#allocation2 + $0x10] sm:$0xf]  ;;  %v413_v36 = vld [vmem:[#allocation2] sm:$0xf] }
  0x92   : > { %v387_v13 = vld [vmem:[#allocation2 + $0x8] sm:$0xf]  ;;  %v1985_v14 = vpack.c.bf16 %v388_v12, %v388_v12  ;;  %v1980_v16 = vpack.c.bf16 %v337_v11, %v336_v9  ;;  %v444_v17 = vld [vmem:[#allocation2 + $0x10] sm:$0xf]  ;;  %v469_v43 = vld [vmem:[#allocation2] sm:$0xf] }
  0x93   : > { %v1984_v15 = vpack.c.bf16 %v387_v13, %v386_v10  ;;  %v443_v18 = vld [vmem:[#allocation2 + $0x8] sm:$0xf]  ;;  %v1989_v20 = vpack.c.bf16 %v444_v17, %v444_v17  ;;  %v500_v22 = vld [vmem:[#allocation2 + $0x10] sm:$0xf]  ;;  %v525_v50 = vld [vmem:[#allocation2] sm:$0xf] }
  0x94   : > { %402 = vrot.lane.b32.xlu0 %v1985_v14, %s2147_s12  ;;  %352 = vst [vmem:[#allocation3] sm:$0x33] %v1980_v16  ;;  %v1988_v21 = vpack.c.bf16 %v443_v18, %v442_v19  ;;  %v499_v23 = vld [vmem:[#allocation2 + $0x8] sm:$0xf]  ;;  %v357_v24 = vld [vmem:[#allocation2 + $0x10] sm:$0xf]  ;;  %v1993_v30 = vpack.c.bf16 %v500_v22, %v500_v22 }
  0x95   : > { %400 = vrot.lane.b32.xlu1 %v1984_v15, %s2147_s12  ;;  %v356_v25 = vld [vmem:[#allocation2 + $0x8] sm:$0xf]  ;;  %v338_v26 = vld [vmem:[#allocation2 + $0x10] sm:$0xf]  ;;  %v1992_v31 = vpack.c.bf16 %v499_v23, %v498_v27  ;;  %v1983_v32 = vpack.c.bf16 %v357_v24, %v357_v24  ;;  %v554_v59 = vld [vmem:[#allocation2] sm:$0xf] }
  0x96   : > { %v1981_v29 = vpack.c.bf16 %v338_v26, %v338_v26  ;;  %v1982_v33 = vpack.c.bf16 %v356_v25, %v355_v28  ;;  %v415_v34 = vld [vmem:[#allocation2 + $0x10] sm:$0xf]  ;;  %v414_v35 = vld [vmem:[#allocation2 + $0x8] sm:$0xf] }
  0x97   : > { %v370_v37 = vrot.slane %v1983_v32, 6  ;;  %v1987_v39 = vpack.c.bf16 %v415_v34, %v415_v34  ;;  %v1986_v40 = vpack.c.bf16 %v414_v35, %v413_v36  ;;  %v471_v41 = vld [vmem:[#allocation2 + $0x10] sm:$0xf]  ;;  %v470_v42 = vld [vmem:[#allocation2 + $0x8] sm:$0xf] }
  0x98   : > { %458 = vrot.lane.b32.xlu0 %v1989_v20, %s2148_s13  ;;  %354 = vst.msk [vmem:[#allocation3 + $0x8] sm:$0x3] %vm353_vm4, %v1981_v29  ;;  %v369_v38 = vrot.slane %v1982_v33, 6  ;;  %v1991_v46 = vpack.c.bf16 %v471_v41, %v471_v41  ;;  %v1990_v47 = vpack.c.bf16 %v470_v42, %v469_v43  ;;  %v527_v48 = vld [vmem:[#allocation2 + $0x10] sm:$0xf] }
  0x99   : > { %456 = vrot.lane.b32.xlu1 %v1988_v21, %s2148_s13  ;;  %v428_v44 = vrot.slane %v1987_v39, 6  ;;  %v427_v45 = vrot.slane %v1986_v40, 6  ;;  %v526_v49 = vld [vmem:[#allocation2 + $0x8] sm:$0xf]  ;;  %v1995_v53 = vpack.c.bf16 %v527_v48, %v527_v48  ;;  %v556_v57 = vld [vmem:[#allocation2 + $0x10] sm:$0xf] }
  0x9a   : > { %v484_v51 = vrot.slane %v1991_v46, 6  ;;  %v483_v52 = vrot.slane %v1990_v47, 6  ;;  %v1994_v54 = vpack.c.bf16 %v526_v49, %v525_v50  ;;  %v555_v58 = vld [vmem:[#allocation2 + $0x8] sm:$0xf]  ;;  %v1997_v60 = vpack.c.bf16 %v556_v57, %v556_v57 }
  0x9b   : > { %v540_v55 = vrot.slane %v1995_v53, 6  ;;  %v1996_v61 = vpack.c.bf16 %v555_v58, %v554_v59  ;;  %v581_v58 = vld [vmem:[%s2535_s1] sm:$0xf] }
  0x9c   : > { %514 = vrot.lane.b32.xlu0 %v1993_v30, %s2149_s14  ;;  %v539_v56 = vrot.slane %v1994_v54, 6 }
  0x9d   : > { %512 = vrot.lane.b32.xlu1 %v1992_v31, %s2149_s14 }
  0xa0   : > { %373 = vrot.lane.b32.xlu0 %v370_v37, %s2150_s15 }
  0xa1   : > { %371 = vrot.lane.b32.xlu1 %v369_v38, %s2150_s15 }
  0xa4   : > { %431 = vrot.lane.b32.xlu0 %v428_v44, %s2151_s16 }
  0xa5   : > { %429 = vrot.lane.b32.xlu1 %v427_v45, %s2151_s16 }
  0xa8   : > { %487 = vrot.lane.b32.xlu0 %v484_v51, %s2152_s17 }
  0xa9   : > { %485 = vrot.lane.b32.xlu1 %v483_v52, %s2152_s17 }
  0xac   : > { %543 = vrot.lane.b32.xlu0 %v540_v55, %s2153_s18 }
  0xad   : > { %541 = vrot.lane.b32.xlu1 %v539_v56, %s2153_s18 }
  0xb0   : > { %570 = vrot.lane.b32.xlu0 %v1997_v60, %s2154_s19 }
  0xb1   : > { %568 = vrot.lane.b32.xlu1 %v1996_v61, %s2154_s19 }
  0xb5   : > { %595 = vperm.xlu1 %2113, %v592_v63  }
 0x106   : > { %v403_v1 = vpop.permute.xlu0 %402 }
 0x107   : > { %v401_v2 = vpop.permute.xlu1 %400  ;;  %v405_v3 = vrot.slane %v403_v1, 4  ;;  %412 = vst.msk [vmem:[#allocation3 + $0x14] sm:$0x3] %vm353_vm4, %v403_v1 }
 0x108   : > { %v404_v4 = vrot.slane %v401_v2, 4 }
 0x10a   : > { %v406_v5 = vsel %vm377_vm6, %v404_v4, %v405_v3  ;;  %v459_v7 = vpop.permute.xlu0 %458 }
 0x10b   : > { %v408_v6 = vsel %vm2552_vm7, %v401_v2, %v406_v5  ;;  %v457_v8 = vpop.permute.xlu1 %456  ;;  %v461_v9 = vrot.slane %v459_v7, 4  ;;  %468 = vst.msk [vmem:[#allocation3 + $0x20] sm:$0x3] %vm353_vm4, %v459_v7 }
 0x10c   : > { %411 = vst [vmem:[#allocation3 + $0xc] sm:$0x33] %v408_v6  ;;  %v460_v10 = vrot.slane %v457_v8, 4 }
 0x10e   : > { %v462_v11 = vsel %vm377_vm6, %v460_v10, %v461_v9  ;;  %v515_v13 = vpop.permute.xlu0 %514 }
 0x10f   : > { %v464_v12 = vsel %vm463_vm8, %v457_v8, %v462_v11  ;;  %v513_v14 = vpop.permute.xlu1 %512  ;;  %v517_v15 = vrot.slane %v515_v13, 4  ;;  %524 = vst.msk [vmem:[#allocation3 + $0x2c] sm:$0x3] %vm353_vm4, %v515_v13 }
 0x110   : > { %467 = vst [vmem:[#allocation3 + $0x18] sm:$0x33] %v464_v12  ;;  %v516_v16 = vrot.slane %v513_v14, 4 }
 0x112   : > { %v518_v17 = vsel %vm377_vm6, %v516_v16, %v517_v15  ;;  %v374_v19 = vpop.permute.xlu0 %373 }
 0x113   : > { %v520_v18 = vsel %vm2548_vm9, %v513_v14, %v518_v17  ;;  %v372_v20 = vpop.permute.xlu1 %371  ;;  %v376_v21 = vrot.slane %v374_v19, 4  ;;  %385 = vst.msk [vmem:[#allocation3 + $0x8] sm:$0xc] %vm384_vm10, %v374_v19 }
 0x114   : > { %523 = vst [vmem:[#allocation3 + $0x24] sm:$0x33] %v520_v18  ;;  %v375_v22 = vrot.slane %v372_v20, 4 }
 0x116   : > { %v378_v23 = vsel %vm377_vm6, %v375_v22, %v376_v21  ;;  %v432_v25 = vpop.permute.xlu0 %431 }
 0x117   : > { %v380_v24 = vsel %vm2553_vm11, %v372_v20, %v378_v23  ;;  %v430_v26 = vpop.permute.xlu1 %429  ;;  %v434_v27 = vrot.slane %v432_v25, 4  ;;  %441 = vst.msk [vmem:[#allocation3 + $0x14] sm:$0xc] %vm384_vm10, %v432_v25 }
 0x118   : > { %383 = vst [vmem:[#allocation3] sm:$0xcc] %v380_v24  ;;  %v433_v28 = vrot.slane %v430_v26, 4 }
 0x11a   : > { %v435_v29 = vsel %vm377_vm6, %v433_v28, %v434_v27  ;;  %v488_v31 = vpop.permute.xlu0 %487 }
 0x11b   : > { %v437_v30 = vsel %vm2551_vm12, %v430_v26, %v435_v29  ;;  %v486_v32 = vpop.permute.xlu1 %485  ;;  %v490_v33 = vrot.slane %v488_v31, 4  ;;  %497 = vst.msk [vmem:[#allocation3 + $0x20] sm:$0xc] %vm384_vm10, %v488_v31  ;;  %v776_v29 = vlaneseq }
 0x11c   : > { %440 = vst [vmem:[#allocation3 + $0xc] sm:$0xcc] %v437_v30  ;;  %v489_v34 = vrot.slane %v486_v32, 4  ;;  %v307_v30 = vld [vmem:[%s2541_s7] sm:$0x7] }
 0x11d   : > { %v777_v31 = vshrl.u32 %v776_v29, 7 }
 0x11e   : > { %v491_v35 = vsel %vm377_vm6, %v489_v34, %v490_v33  ;;  %v544_v37 = vpop.permute.xlu0 %543  ;;  %v2116_v39 = vld [vmem:[#allocation3 + $0x8] ss:$12 sps:$4 sm:$0xff]  }
 0x11f   : > { %v493_v36 = vsel %vm2549_vm13, %v486_v32, %v491_v35  ;;  %v542_v38 = vpop.permute.xlu1 %541  ;;  %v546_v40 = vrot.slane %v544_v37, 4  ;;  %553 = vst.msk [vmem:[#allocation3 + $0x2c] sm:$0xc] %vm384_vm10, %v544_v37  ;;  %2051 = vmatpush3.bf16.msra.mxu1 %v2116_v39  ;;  %vm2544_vm10 = vcmask 712232   ;;  %v778_v34 = vsub.s32 0, %v777_v31 }
 0x120   : > { %496 = vst [vmem:[#allocation3 + $0x18] sm:$0xcc] %v493_v36  ;;  %v545_v41 = vrot.slane %v542_v38, 4  ;;  %2052 = vmatprep.subr.bf16.mxu1 %v2145_v0  ;;  %v786_v39 = vsub.s32 2, %v777_v31 }
 0x122   : > { %v547_v42 = vsel %vm377_vm6, %v545_v41, %v546_v40  ;;  %v571_v44 = vpop.permute.xlu0 %570  ;;  %v782_v41 = vsub.s32 1, %v777_v31 }
 0x123   : > { %v549_v43 = vsel %vm2547_vm14, %v542_v38, %v547_v42  ;;  %v569_v45 = vpop.permute.xlu1 %568  ;;  %v2117_v46 = vld [vmem:[#allocation3 + $0x4] ss:$12 sps:$4 sm:$0xff]   ;;  %v2119_v47 = vld [vmem:[#allocation3] ss:$12 sps:$4 sm:$0xff]   ;;  %v573_v48 = vrot.slane %v571_v44, 4 }
 0x124   : > { %552 = vst [vmem:[#allocation3 + $0x24] sm:$0xcc] %v549_v43  ;;  %580 = vst.msk [vmem:[#allocation3 + $0x38] sm:$0x3] %vm353_vm4, %v571_v44  ;;  %v572_v49 = vrot.slane %v569_v45, 4  ;;  %652 = vmatprep.subr.bf16.mxu0 %v2117_v46  ;;  %vm753_vm4 = vcmask 1047704  }
 0x125   : > { %653 = vmatpush1.bf16.msra.mxu0 %v2119_v47 }
 0x126   : > { %v574_v50 = vsel %vm377_vm6, %v572_v49, %v573_v48  ;;  %v2120_v52 = vld [vmem:[#allocation3 + $0x20] ss:$12 sps:$4 sm:$0xff]  }
 0x127   : > { %v576_v51 = vsel %vm2546_vm15, %v569_v45, %v574_v50  ;;  %2053 = vmatpush3.bf16.msra.mxu1 %v2120_v52 }
 0x128   : > { %579 = vst [vmem:[#allocation3 + $0x30] sm:$0x33] %v576_v51  ;;  %2054 = vmatprep.subr.bf16.mxu1 %v2145_v0 }
 0x12b   : > { %v2121_v53 = vld [vmem:[#allocation3 + $0x1c] ss:$12 sps:$4 sm:$0xff]   ;;  %v2123_v54 = vld [vmem:[#allocation3 + $0x18] ss:$12 sps:$4 sm:$0xff]  }
 0x12c   : > { %v2124_v55 = vld [vmem:[#allocation3 + $0x38] ss:$0 sps:$4 sm:$0x33]   ;;  %654 = vmatprep.subr.bf16.mxu0 %v2121_v53 }
 0x12d   : > { %655 = vmatpush1.bf16.msra.mxu0 %v2123_v54  ;;  %v650_v56 = vsel %vm642_vm0, %v2124_v55, 0 }
 0x12e   : > { %2055 = vmatpush3.bf16.msra.mxu1 %v650_v56 }
 0x12f   : > { %v590_v57 = vld [vmem:[#allocation3 + $0x30] sm:$0x33]  ;;  %2060 = vmatprep.subr.bf16.mxu1 %v2145_v0 }
 0x130   : > { %v1901_v59 = vcombine.high %v590_v57, %v590_v57  ;;  %v1900_v60 = vcombine.low %v590_v57, %v590_v57 }
 0x131   : > { %2057 = vmatmul.mubr.msk.bf16.vlgmr.msra.gmra.mrb[0].mxu1 %vm638_vm1, %v581_v58 }
 0x132   : > { %1903 = vmatprep.subr.msk.bf16.mxu0 %vm642_vm0, %v1901_v59  ;;  %v644_v61 = vsel %vm642_vm0, %v1900_v60, 0  ;;  %2070 = vmatprep.mubr.msk.bf16.mxu1 %vm2545_vm5, %v2145_v0  ;;  %vm2543_vm0 = vcmask 302232   ;;  %vm843_vm5 = vcmask 875520  }
 0x133   : > { %657 = vmatpush1.bf16.msra.mxu0 %v644_v61 }
 0x134   : > { %v596_v63 = vpop.permute.xlu1 %595 }
 0x136   : > { %1904 = vmatmul.mubr.msk.bf16.vlgmr.msra.gmra.mrb[0].mxu0 %vm638_vm1, %v581_v58  ;;  %vm309_vm1 = vcmp.eq.s32.totalorder %v307_v30, 17 }
 0x137   : > { %1239 = vmatprep.mubr.bf16.mxu0 %v2156_v62  ;;  %v775_v35 = vsel %vm309_vm1, 1, %v2156_v62 }
 0x138   : > { %v2320_v40 = vrot.slane %v775_v35, %v778_v34  ;;  %v2324_v45 = vrot.slane %v775_v35, %v786_v39  ;;  %v2329_v48 = vrot.slane %v775_v35, %v782_v41 }
 0x13a   : > { %vm788_vm15 = vcmp.eq.s32.totalorder %v2320_v40, 1  ;;  %vm790_vm1 = vcmp.eq.s32.totalorder %v2324_v45, 1  ;;  %vm789_vm14 = vcmp.eq.s32.totalorder %v2329_v48, 1 }
 0x204   : > { %v727_v1 = vpop.f32.mrb[0].mxu1 }
 0x205   : > { %v728_v2 = vadd.f32 %v727_v1, %v596_v63  ;;  %v2058_v3 = vpop.f32.mrb[1].mxu1 }
 0x206   : > { %v730_v4 = vpop.f32.mrb[2].mxu1 }
 0x207   : > { %v735_v5 = vmul.f32 0.2, %v728_v2  ;;  %v2059_v6 = vpop.f32.mrb[3].mxu1 }
 0x209   : > { %v686_v7 = vpop.f32.mrb[0].mxu0  ;;  %v2286_v9 = vmax.f32 %v728_v2, %v735_v5 }
 0x20a   : > { %v688_v8 = vpop.f32.mrb[1].mxu0  ;;  %v687_v10 = vadd.f32 %v686_v7, %v596_v63 }
 0x20b   : > { %v689_v11 = vadd.f32 %v688_v8, %v596_v63  ;;  %v690_v12 = vpop.f32.mrb[2].mxu0  ;;  %746 = vrot.lane.b32.xlu1 %v2286_v9, %s2146_s11 }
 0x20c   : > { %v691_v13 = vpop.f32.mrb[3].mxu0  ;;  %v733_v15 = vmul.f32 0.2, %v687_v10  ;;  %v1115_v12 = vld [vmem:[%s2538_s4] sm:$0xff] }
 0x20d   : > { %v734_v14 = vmul.f32 0.2, %v689_v11 }
 0x20e   : > { %v2294_v17 = vmax.f32 %v687_v10, %v733_v15 }
 0x20f   : > { %v2290_v16 = vmax.f32 %v689_v11, %v734_v14 }
 0x211   : > { %744 = vrot.lane.b32.xlu0 %v2290_v16, %s2146_s11 }
 0x215   : > { %742 = vrot.lane.b32.xlu0 %v2294_v17, %s2146_s11 }
 0x27d   : > { %v747_v18 = vpop.permute.xlu1 %746 }
 0x283   : > { %v745_v19 = vpop.permute.xlu0 %744 }
 0x284   : > { %v749_v20 = vsel %vm325_vm2, %v745_v19, %v747_v18 }
 0x285   : > { %757 = vst.msk [vmem:[#allocation2 + $0x10] sm:$0xff] %vm756_vm3, %v749_v20 }
 0x287   : > { %v743_v21 = vpop.permute.xlu0 %742 }
 0x288   : > { %754 = vst.msk [vmem:[#allocation2] sm:$0xff] %vm753_vm4, %v743_v21  ;;  %v748_v24 = vsel %vm325_vm2, %v743_v21, %v745_v19 }
 0x28c   : > { %v765_v22 = vld [vmem:[#allocation2 + $0x10] sm:$0xff] }
 0x28d   : > { %767 = vrot.lane.b32.xlu0 %v765_v22, %s2157_s24 }
 0x28f   : > { %v758_v23 = vld [vmem:[#allocation2] sm:$0xff] }
 0x290   : > { %760 = vrot.lane.b32.xlu1 %v758_v23, %s2149_s14 }
 0x291   : > { %796 = vrot.lane.b32.xlu0 %v748_v24, %s2158_s25 }
 0x294   : > { %808 = vrot.lane.b32.xlu1 %v748_v24, %s2148_s13 }
 0x2ff   : > { %v768_v25 = vpop.permute.xlu0 %767 }
 0x300   : > { %771 = vst.msk [vmem:[#allocation2 + $0x10] sm:$0xff] %vm2544_vm10, %v768_v25  ;;  %vm800_vm10 = vcmask 908288  }
 0x302   : > { %v761_v26 = vpop.permute.xlu1 %760 }
 0x303   : > { %764 = vst.msk [vmem:[#allocation2] sm:$0xff] %vm2543_vm0, %v761_v26  ;;  %v797_v32 = vpop.permute.xlu0 %796  ;;  %vm308_vm0 = vcmp.eq.s32.totalorder %v307_v30, 0 }
 0x304   : > { %v821_v38 = vsel %vm308_vm0, 1, %v2156_v62 }
 0x305   : > { %v2322_v42 = vrot.slane %v821_v38, %v778_v34  ;;  %v2331_v49 = vrot.slane %v821_v38, %v786_v39  ;;  %v2334_v50 = vrot.slane %v821_v38, %v782_v41 }
 0x306   : > { %v809_v33 = vpop.permute.xlu1 %808 }
 0x307   : > { %v774_v28 = vld [vmem:[#allocation2 + $0x10] sm:$0xff]  ;;  %vm834_vm0 = vcmp.eq.s32.totalorder %v2322_v42, 1  ;;  %vm836_vm9 = vcmp.eq.s32.totalorder %v2331_v49, 1  ;;  %vm2550_vm13 = vcmp.eq.s32.totalorder %v2334_v50, 1 }
 0x30a   : > { %v772_v27 = vld [vmem:[#allocation2] sm:$0xff] }
 0x30b   : > { %794 = vrot.lane.b32.xlu1 %v772_v27, %s2158_s25  ;;  %806 = vrot.lane.b32.xlu0 %v772_v27, %s2148_s13 }
 0x30f   : > { %837 = vrot.lane.b32.xlu1 %v772_v27, %s2159_s26  ;;  %810 = vrot.lane.b32.xlu0 %v774_v28, %s2148_s13 }
 0x313   : > { %839 = vrot.lane.b32.xlu0 %v748_v24, %s2159_s26  ;;  %798 = vrot.lane.b32.xlu1 %v774_v28, %s2158_s25 }
 0x317   : > { %841 = vrot.lane.b32.xlu1 %v774_v28, %s2159_s26 }
 0x37d   : > { %v795_v36 = vpop.permute.xlu1 %794  ;;  %v807_v37 = vpop.permute.xlu0 %806 }
 0x37e   : > { %v801_v46 = vsel %vm800_vm10, %v795_v36, %v797_v32  ;;  %v813_v47 = vsel %vm463_vm8, %v807_v37, %v809_v33 }
 0x37f   : > { %v818_v54 = vsel %vm788_vm15, %v801_v46, %v813_v47 }
 0x381   : > { %v838_v43 = vpop.permute.xlu1 %837  ;;  %v811_v44 = vpop.permute.xlu0 %810 }
 0x382   : > { %v814_v57 = vsel %vm463_vm8, %v809_v33, %v811_v44 }
 0x385   : > { %v799_v51 = vpop.permute.xlu1 %798  ;;  %v840_v52 = vpop.permute.xlu0 %839 }
 0x386   : > { %v844_v53 = vsel %vm843_vm5, %v838_v43, %v840_v52  ;;  %v802_v55 = vsel %vm800_vm10, %v797_v32, %v799_v51  ;;  %v820_v58 = vsel %vm790_vm1, %v799_v51, %v811_v44 }
 0x387   : > { %v849_v56 = vsel %vm834_vm0, %v844_v53, %v818_v54  ;;  %v819_v61 = vsel %vm789_vm14, %v802_v55, %v814_v57 }
 0x388   : > { %855 = vrot.lane.b32.xlu0 %v849_v56, %s2146_s11 }
 0x389   : > { %v842_v59 = vpop.permute.xlu1 %841 }
 0x38a   : > { %v845_v60 = vsel %vm843_vm5, %v840_v52, %v842_v59  ;;  %v851_v63 = vsel %vm836_vm9, %v842_v59, %v820_v58 }
 0x38b   : > { %v850_v1 = vsel %vm2550_vm13, %v845_v60, %v819_v61  ;;  %vm886_vm13 = vcmask 551936  }
 0x38c   : > { %857 = vrot.lane.b32.xlu1 %v850_v1, %s2146_s11  ;;  %859 = vrot.lane.b32.xlu0 %v851_v63, %s2146_s11 }
 0x3fa   : > { %v856_v2 = vpop.permute.xlu0 %855 }
 0x3fb   : > { %866 = vst.msk [vmem:[#allocation2] sm:$0xff] %vm753_vm4, %v856_v2 }
 0x3fe   : > { %v858_v3 = vpop.permute.xlu1 %857  ;;  %v860_v4 = vpop.permute.xlu0 %859 }
 0x3ff   : > { %v862_v5 = vsel %vm325_vm2, %v858_v3, %v860_v4  ;;  %v861_v7 = vsel %vm325_vm2, %v856_v2, %v858_v3 }
 0x400   : > { %868 = vst.msk [vmem:[#allocation2 + $0x10] sm:$0xff] %vm756_vm3, %v862_v5 }
 0x402   : > { %v869_v6 = vld [vmem:[#allocation2] sm:$0xff] }
 0x403   : > { %v1998_v8 = vpack.c.bf16 %v861_v7, %v869_v6 }
 0x405   : > { %902 = vrot.lane.b32.xlu1 %v1998_v8, %s2150_s15 }
 0x407   : > { %v871_v10 = vld [vmem:[#allocation2 + $0x10] sm:$0xff] }
 0x408   : > { %v1999_v11 = vpack.c.bf16 %v871_v10, %v871_v10 }
 0x409   : > { %928 = vrot.lane.b32.xlu1 %v1998_v8, %s2147_s12 }
 0x40a   : > { %904 = vrot.lane.b32.xlu0 %v1999_v11, %s2150_s15  ;;  %887 = vst.msk [vmem:[#allocation3 + $0x8] sm:$0xf] %vm886_vm13, %v1999_v11 }
 0x40d   : > { %954 = vrot.lane.b32.xlu1 %v1998_v8, %s2151_s16 }
 0x40e   : > { %930 = vrot.lane.b32.xlu0 %v1999_v11, %s2147_s12 }
 0x411   : > { %980 = vrot.lane.b32.xlu1 %v1998_v8, %s2148_s13 }
 0x412   : > { %956 = vrot.lane.b32.xlu0 %v1999_v11, %s2151_s16 }
 0x415   : > { %1006 = vrot.lane.b32.xlu1 %v1998_v8, %s2152_s17 }
 0x416   : > { %982 = vrot.lane.b32.xlu0 %v1999_v11, %s2148_s13 }
 0x419   : > { %1032 = vrot.lane.b32.xlu1 %v1998_v8, %s2149_s14 }
 0x41a   : > { %1008 = vrot.lane.b32.xlu0 %v1999_v11, %s2152_s17 }
 0x41d   : > { %1058 = vrot.lane.b32.xlu1 %v1998_v8, %s2153_s18 }
 0x41e   : > { %1034 = vrot.lane.b32.xlu0 %v1999_v11, %s2149_s14 }
 0x421   : > { %1084 = vrot.lane.b32.xlu1 %v1998_v8, %s2154_s19 }
 0x422   : > { %1060 = vrot.lane.b32.xlu0 %v1999_v11, %s2153_s18 }
 0x425   : > { %1118 = vperm.xlu1 %2113, %v1115_v12  }
 0x426   : > { %1086 = vrot.lane.b32.xlu0 %v1999_v11, %s2154_s19 }
 0x477   : > { %v903_v13 = vpop.permute.xlu1 %902 }
 0x478   : > { %v906_v18 = vrot.slane %v903_v13, 4 }
 0x47b   : > { %v929_v14 = vpop.permute.xlu1 %928 }
 0x47c   : > { %v905_v15 = vpop.permute.xlu0 %904  ;;  %v932_v27 = vrot.slane %v929_v14, 4 }
 0x47d   : > { %v907_v19 = vrot.slane %v905_v15, 4  ;;  %913 = vst.msk [vmem:[#allocation3 + $0x14] sm:$0xf] %vm886_vm13, %v905_v15 }
 0x47f   : > { %v908_v20 = vsel %vm377_vm6, %v906_v18, %v907_v19  ;;  %v955_v21 = vpop.permute.xlu1 %954 }
 0x480   : > { %v909_v22 = vsel %vm2553_vm11, %v903_v13, %v908_v20  ;;  %v931_v23 = vpop.permute.xlu0 %930  ;;  %v958_v32 = vrot.slane %v955_v21, 4  ;;  %vm2557_vm11 = vcmask 736256  }
 0x481   : > { %v933_v24 = vrot.slane %v931_v23, 4  ;;  %939 = vst.msk [vmem:[#allocation3 + $0x20] sm:$0xf] %vm886_vm13, %v931_v23  ;;  %v1925_v25 = vcombine.high %v1998_v8, %v909_v22  ;;  %v1924_v26 = vcombine.low %v1998_v8, %v909_v22 }
 0x483   : > { %v981_v28 = vpop.permute.xlu1 %980  ;;  %1207 = vmatprep.subr.bf16.mxu0 %v1925_v25  ;;  %v934_v31 = vsel %vm377_vm6, %v932_v27, %v933_v24  ;;  %v1096_v24 = vld [vmem:[%s2537_s3] sm:$0xf] }
 0x484   : > { %v957_v29 = vpop.permute.xlu0 %956  ;;  %v2127_v30 = vld [vmem:[#allocation3 + $0x8] ss:$12 sps:$4 sm:$0xff]   ;;  %1208 = vmatpush1.bf16.msra.mxu0 %v1924_v26  ;;  %v935_v36 = vsel %vm2552_vm7, %v929_v14, %v934_v31  ;;  %v984_v44 = vrot.slane %v981_v28, 4  ;;  %vm2556_vm7 = vcmask 744448  }
 0x485   : > { %v959_v33 = vrot.slane %v957_v29, 4  ;;  %965 = vst.msk [vmem:[#allocation3 + $0x2c] sm:$0xf] %vm886_vm13, %v957_v29  ;;  %2061 = vmatpush3.bf16.msra.mxu1 %v2127_v30 }
 0x486   : > { %2062 = vmatprep.subr.bf16.mxu1 %v2145_v0 }
 0x487   : > { %v960_v34 = vsel %vm377_vm6, %v958_v32, %v959_v33  ;;  %v1007_v35 = vpop.permute.xlu1 %1006 }
 0x488   : > { %v961_v37 = vsel %vm2551_vm12, %v955_v21, %v960_v34  ;;  %v983_v38 = vpop.permute.xlu0 %982  ;;  %v1010_v53 = vrot.slane %v1007_v35, 4  ;;  %vm2554_vm12 = vcmask 883712  }
 0x489   : > { %v985_v39 = vrot.slane %v983_v38, 4  ;;  %991 = vst.msk [vmem:[#allocation3 + $0x38] sm:$0xf] %vm886_vm13, %v983_v38  ;;  %v1928_v41 = vcombine.high %v935_v36, %v961_v37  ;;  %v1927_v43 = vcombine.low %v935_v36, %v961_v37 }
 0x48b   : > { %v1033_v46 = vpop.permute.xlu1 %1032  ;;  %1209 = vmatprep.subr.bf16.mxu0 %v1928_v41  ;;  %v986_v52 = vsel %vm377_vm6, %v984_v44, %v985_v39 }
 0x48c   : > { %v1009_v47 = vpop.permute.xlu0 %1008  ;;  %v2128_v51 = vld [vmem:[#allocation3 + $0x20] ss:$12 sps:$4 sm:$0xff]   ;;  %1210 = vmatpush1.bf16.msra.mxu0 %v1927_v43  ;;  %v987_v56 = vsel %vm463_vm8, %v981_v28, %v986_v52  ;;  %v1036_v1 = vrot.slane %v1033_v46, 4 }
 0x48d   : > { %v1011_v54 = vrot.slane %v1009_v47, 4  ;;  %1017 = vst.msk [vmem:[#allocation3 + $0x44] sm:$0xf] %vm886_vm13, %v1009_v47  ;;  %2063 = vmatpush3.bf16.msra.mxu1 %v2128_v51 }
 0x48e   : > { %2064 = vmatprep.subr.bf16.mxu1 %v2145_v0 }
 0x48f   : > { %v1012_v55 = vsel %vm377_vm6, %v1010_v53, %v1011_v54  ;;  %v1059_v59 = vpop.permute.xlu1 %1058 }
 0x490   : > { %v1013_v57 = vsel %vm2554_vm12, %v1007_v35, %v1012_v55  ;;  %v1035_v58 = vpop.permute.xlu0 %1034  ;;  %v1062_v5 = vrot.slane %v1059_v59, 4  ;;  %vm2555_vm12 = vcmask 752640  }
 0x491   : > { %v1037_v60 = vrot.slane %v1035_v58, 4  ;;  %1043 = vst.msk [vmem:[#allocation3 + $0x50] sm:$0xf] %vm886_vm13, %v1035_v58  ;;  %v1931_v61 = vcombine.high %v987_v56, %v1013_v57  ;;  %v1930_v63 = vcombine.low %v987_v56, %v1013_v57 }
 0x493   : > { %1211 = vmatprep.subr.bf16.mxu0 %v1931_v61  ;;  %v1038_v4 = vsel %vm377_vm6, %v1036_v1, %v1037_v60  ;;  %v1085_v7 = vpop.permute.xlu1 %1084 }
 0x494   : > { %v1061_v2 = vpop.permute.xlu0 %1060  ;;  %v2129_v3 = vld [vmem:[#allocation3 + $0x38] ss:$12 sps:$4 sm:$0xff]   ;;  %1212 = vmatpush1.bf16.msra.mxu0 %v1930_v63  ;;  %v1039_v10 = vsel %vm2555_vm12, %v1033_v46, %v1038_v4  ;;  %v1088_v13 = vrot.slane %v1085_v7, 4  ;;  %vm2559_vm12 = vcmask 712232  }
 0x495   : > { %v1063_v6 = vrot.slane %v1061_v2, 4  ;;  %1069 = vst.msk [vmem:[#allocation3 + $0x5c] sm:$0xf] %vm886_vm13, %v1061_v2  ;;  %2065 = vmatpush3.bf16.msra.mxu1 %v2129_v3 }
 0x496   : > { %2066 = vmatprep.subr.bf16.mxu1 %v2145_v0 }
 0x497   : > { %v1064_v8 = vsel %vm377_vm6, %v1062_v5, %v1063_v6 }
 0x498   : > { %v1065_v11 = vsel %vm2556_vm7, %v1059_v59, %v1064_v8  ;;  %v1087_v12 = vpop.permute.xlu0 %1086  ;;  %vm1193_vm7 = vcmask 588800  }
 0x499   : > { %v1089_v14 = vrot.slane %v1087_v12, 4  ;;  %1095 = vst.msk [vmem:[#allocation3 + $0x68] sm:$0xf] %vm886_vm13, %v1087_v12  ;;  %v1934_v15 = vcombine.high %v1039_v10, %v1065_v11  ;;  %v1933_v18 = vcombine.low %v1039_v10, %v1065_v11 }
 0x49b   : > { %v1090_v19 = vsel %vm377_vm6, %v1088_v13, %v1089_v14  ;;  %1213 = vmatprep.subr.bf16.mxu0 %v1934_v15 }
 0x49c   : > { %v1091_v20 = vsel %vm2557_vm11, %v1085_v7, %v1090_v19  ;;  %v2130_v21 = vld [vmem:[#allocation3 + $0x50] ss:$12 sps:$4 sm:$0xff]   ;;  %1214 = vmatpush1.bf16.msra.mxu0 %v1933_v18  ;;  %vm2558_vm11 = vmmov 0  }
 0x49d   : > { %v1937_v22 = vcombine.high %v1091_v20, %v1091_v20  ;;  %v1936_v23 = vcombine.low %v1091_v20, %v1091_v20  ;;  %2067 = vmatpush3.bf16.msra.mxu1 %v2130_v21 }
 0x49e   : > { %2068 = vmatprep.subr.bf16.mxu1 %v2145_v0 }
 0x49f   : > { %1939 = vmatprep.subr.msk.bf16.mxu0 %vm377_vm6, %v1937_v22  ;;  %v1199_v25 = vsel %vm377_vm6, %v1936_v23, 0 }
 0x4a0   : > { %v2131_v26 = vld [vmem:[#allocation3 + $0x68] ss:$0 sps:$4 sm:$0xff]   ;;  %1216 = vmatpush1.bf16.msra.mxu0 %v1199_v25 }
 0x4a1   : > { %v1205_v27 = vsel %vm377_vm6, %v2131_v26, 0 }
 0x4a2   : > { %2069 = vmatpush3.bf16.msra.mxu1 %v1205_v27  ;;  %v1630_v27 = vld [vmem:[%s2540_s6] sm:$0xff] }
 0x4a3   : > { %1940 = vmatmul.mubr.msk.bf16.vlgmr.msra.gmra.mrb[4].mxu0 %vm1193_vm7, %v1096_v24  ;;  %2074 = vmatprep.subr.bf16.mxu1 %v2145_v0 }
 0x4a4   : > { %1752 = vmatprep.mubr.bf16.mxu0 %v2156_v62  ;;  %v1119_v29 = vpop.permute.xlu1 %1118 }
 0x4a5   : > { %2071 = vmatmul.mubr.msk.bf16.vlgmr.msra.gmra.mrb[4].mxu1 %vm1193_vm7, %v1096_v24 }
 0x4a6   : > { %2084 = vmatprep.mubr.msk.bf16.mxu1 %vm2558_vm11, %v2145_v0  ;;  %vm2560_vm11 = vcmask 302232  }
 0x576   : > { %v1241_v28 = vpop.f32.mrb[4].mxu0 }
 0x577   : > { %v1243_v30 = vpop.f32.mrb[5].mxu0  ;;  %v1242_v31 = vadd.f32 %v1241_v28, %v1119_v29 }
 0x578   : > { %v1244_v32 = vadd.f32 %v1243_v30, %v1119_v29  ;;  %v1245_v33 = vpop.f32.mrb[6].mxu0  ;;  %v1282_v34 = vpop.f32.mrb[4].mxu1 }
 0x579   : > { %v1246_v35 = vpop.f32.mrb[7].mxu0  ;;  %v1283_v36 = vadd.f32 %v1282_v34, %v1119_v29  ;;  %v2072_v38 = vpop.f32.mrb[5].mxu1  ;;  %v1288_v43 = vmul.f32 0.2, %v1242_v31 }
 0x57a   : > { %v1289_v37 = vmul.f32 0.2, %v1244_v32  ;;  %v1285_v39 = vpop.f32.mrb[6].mxu1 }
 0x57b   : > { %v1290_v41 = vmul.f32 0.2, %v1283_v36  ;;  %v2073_v44 = vpop.f32.mrb[7].mxu1  ;;  %v1291_v47 = vmax.f32 %v1242_v31, %v1288_v43 }
 0x57c   : > { %v1292_v62 = vmax.f32 %v1244_v32, %v1289_v37 }
 0x57d   : > { %v1293_v46 = vmax.f32 %v1283_v36, %v1290_v41 }
 0x57e   : > { %1299 = vrot.lane.b32.xlu0 %v1292_v62, %s2146_s11 }
 0x57f   : > { %1301 = vrot.lane.b32.xlu1 %v1293_v46, %s2146_s11 }
 0x582   : > { %1297 = vrot.lane.b32.xlu0 %v1291_v47, %s2146_s11 }
 0x5f0   : > { %v1300_v51 = vpop.permute.xlu0 %1299 }
 0x5f1   : > { %v1302_v52 = vpop.permute.xlu1 %1301 }
 0x5f2   : > { %v1304_v53 = vsel %vm325_vm2, %v1300_v51, %v1302_v52 }
 0x5f3   : > { %1310 = vst.msk [vmem:[#allocation2 + $0x10] sm:$0xff] %vm756_vm3, %v1304_v53 }
 0x5f4   : > { %v1298_v54 = vpop.permute.xlu0 %1297 }
 0x5f5   : > { %1308 = vst.msk [vmem:[#allocation2] sm:$0xff] %vm753_vm4, %v1298_v54  ;;  %v1303_v57 = vsel %vm325_vm2, %v1298_v54, %v1300_v51 }
 0x5fa   : > { %v1317_v55 = vld [vmem:[#allocation2 + $0x10] sm:$0xff] }
 0x5fb   : > { %1319 = vrot.lane.b32.xlu0 %v1317_v55, %s2157_s24 }
 0x5fc   : > { %v1311_v56 = vld [vmem:[#allocation2] sm:$0xff] }
 0x5fd   : > { %1313 = vrot.lane.b32.xlu1 %v1311_v56, %s2149_s14 }
 0x5ff   : > { %1331 = vrot.lane.b32.xlu0 %v1303_v57, %s2158_s25 }
 0x601   : > { %1342 = vrot.lane.b32.xlu1 %v1303_v57, %s2148_s13 }
 0x66d   : > { %v1320_v58 = vpop.permute.xlu0 %1319 }
 0x66e   : > { %1322 = vst.msk [vmem:[#allocation2 + $0x10] sm:$0xff] %vm2559_vm12, %v1320_v58 }
 0x66f   : > { %v1314_v59 = vpop.permute.xlu1 %1313 }
 0x670   : > { %1316 = vst.msk [vmem:[#allocation2] sm:$0xff] %vm2560_vm11, %v1314_v59 }
 0x671   : > { %v1332_v63 = vpop.permute.xlu0 %1331 }
 0x673   : > { %v1343_v1 = vpop.permute.xlu1 %1342 }
 0x675   : > { %v1325_v61 = vld [vmem:[#allocation2 + $0x10] sm:$0xff] }
 0x677   : > { %v1323_v60 = vld [vmem:[#allocation2] sm:$0xff] }
 0x678   : > { %1340 = vrot.lane.b32.xlu0 %v1323_v60, %s2148_s13  ;;  %1329 = vrot.lane.b32.xlu1 %v1323_v60, %s2158_s25 }
 0x67c   : > { %1344 = vrot.lane.b32.xlu0 %v1325_v61, %s2148_s13  ;;  %1354 = vrot.lane.b32.xlu1 %v1323_v60, %s2159_s26 }
 0x680   : > { %1356 = vrot.lane.b32.xlu0 %v1303_v57, %s2159_s26  ;;  %1333 = vrot.lane.b32.xlu1 %v1325_v61, %s2158_s25 }
 0x684   : > { %1358 = vrot.lane.b32.xlu1 %v1325_v61, %s2159_s26 }
 0x6ea   : > { %v1341_v2 = vpop.permute.xlu0 %1340  ;;  %v1330_v3 = vpop.permute.xlu1 %1329 }
 0x6eb   : > { %v1346_v6 = vsel %vm463_vm8, %v1341_v2, %v1343_v1  ;;  %v1335_v7 = vsel %vm800_vm10, %v1330_v3, %v1332_v63 }
 0x6ec   : > { %v1351_v12 = vsel %vm788_vm15, %v1335_v7, %v1346_v6  ;;  %vm2561_vm15 = vcmp.eq.s32.totalorder %v2334_v50, 1 }
 0x6ee   : > { %v1345_v4 = vpop.permute.xlu0 %1344  ;;  %v1355_v5 = vpop.permute.xlu1 %1354 }
 0x6ef   : > { %v1347_v15 = vsel %vm463_vm8, %v1343_v1, %v1345_v4 }
 0x6f2   : > { %v1357_v8 = vpop.permute.xlu0 %1356  ;;  %v1334_v10 = vpop.permute.xlu1 %1333 }
 0x6f3   : > { %v1360_v11 = vsel %vm843_vm5, %v1355_v5, %v1357_v8  ;;  %v1336_v13 = vsel %vm800_vm10, %v1332_v63, %v1334_v10  ;;  %v1353_v18 = vsel %vm790_vm1, %v1334_v10, %v1345_v4 }
 0x6f4   : > { %v1365_v14 = vsel %vm834_vm0, %v1360_v11, %v1351_v12  ;;  %v1352_v40 = vsel %vm789_vm14, %v1336_v13, %v1347_v15  ;;  %vm2565_vm14 = vcmask 883712  }
 0x6f5   : > { %1371 = vrot.lane.b32.xlu0 %v1365_v14, %s2146_s11 }
 0x6f6   : > { %v1359_v19 = vpop.permute.xlu1 %1358 }
 0x6f7   : > { %v1361_v20 = vsel %vm843_vm5, %v1357_v8, %v1359_v19  ;;  %v1367_v21 = vsel %vm836_vm9, %v1359_v19, %v1353_v18  ;;  %vm2563_vm5 = vcmask 1031168   ;;  %vm2564_vm9 = vcmask 900096  }
 0x6f8   : > { %v1366_v42 = vsel %vm2561_vm15, %v1361_v20, %v1352_v40 }
 0x6f9   : > { %1375 = vrot.lane.b32.xlu0 %v1367_v21, %s2146_s11  ;;  %1373 = vrot.lane.b32.xlu1 %v1366_v42, %s2146_s11 }
 0x767   : > { %v1372_v22 = vpop.permute.xlu0 %1371 }
 0x768   : > { %1382 = vst.msk [vmem:[#allocation2] sm:$0xff] %vm753_vm4, %v1372_v22  ;;  %vm2568_vm4 = vcmask 736256  }
 0x76b   : > { %v1376_v45 = vpop.permute.xlu0 %1375  ;;  %v1374_v23 = vpop.permute.xlu1 %1373 }
 0x76c   : > { %v1377_v24 = vsel %vm325_vm2, %v1372_v22, %v1374_v23  ;;  %v1378_v49 = vsel %vm325_vm2, %v1374_v23, %v1376_v45  ;;  %vm2562_vm2 = vcmask 1039360  }
 0x76d   : > { %1383 = vst [vmem:[#allocation2 + $0x8] sm:$0xff] %v1377_v24  ;;  %1384 = vst.msk [vmem:[#allocation2 + $0x10] sm:$0xff] %vm756_vm3, %v1378_v49  ;;  %vm2567_vm3 = vcmask 744448  }
 0x76f   : > { %v1385_v48 = vld [vmem:[#allocation2] sm:$0xff] }
 0x770   : > { %v2016_v25 = vpack.c.bf16 %v1377_v24, %v1385_v48 }
 0x772   : > { %1401 = vst [vmem:[#allocation3] sm:$0xff] %v2016_v25  ;;  %1417 = vrot.lane.b32.xlu1 %v2016_v25, %s2150_s15 }
 0x774   : > { %v1387_v50 = vld [vmem:[#allocation2 + $0x10] sm:$0xff] }
 0x775   : > { %v2017_v26 = vpack.c.bf16 %v1387_v50, %v1387_v50 }
 0x776   : > { %1443 = vrot.lane.b32.xlu1 %v2016_v25, %s2147_s12 }
 0x777   : > { %1402 = vst.msk [vmem:[#allocation3 + $0x8] sm:$0xf] %vm886_vm13, %v2017_v26  ;;  %1419 = vrot.lane.b32.xlu0 %v2017_v26, %s2150_s15  ;;  %s2089_s15 = smul.u32 24, %s2570_s28 }
 0x77a   : > { %1469 = vrot.lane.b32.xlu1 %v2016_v25, %s2151_s16 }
 0x77b   : > { %1445 = vrot.lane.b32.xlu0 %v2017_v26, %s2147_s12 }
 0x77e   : > { %1495 = vrot.lane.b32.xlu1 %v2016_v25, %s2148_s13 }
 0x77f   : > { %1471 = vrot.lane.b32.xlu0 %v2017_v26, %s2151_s16 }
 0x782   : > { %1521 = vrot.lane.b32.xlu1 %v2016_v25, %s2152_s17 }
 0x783   : > { %1497 = vrot.lane.b32.xlu0 %v2017_v26, %s2148_s13 }
 0x786   : > { %1547 = vrot.lane.b32.xlu1 %v2016_v25, %s2149_s14 }
 0x787   : > { %1523 = vrot.lane.b32.xlu0 %v2017_v26, %s2152_s17 }
 0x78a   : > { %1573 = vrot.lane.b32.xlu1 %v2016_v25, %s2153_s18 }
 0x78b   : > { %1549 = vrot.lane.b32.xlu0 %v2017_v26, %s2149_s14 }
 0x78e   : > { %1599 = vrot.lane.b32.xlu1 %v2016_v25, %s2154_s19 }
 0x78f   : > { %1575 = vrot.lane.b32.xlu0 %v2017_v26, %s2153_s18  ;;  %s305_s18 = scalar_lea.vmem %s2542_s8, %s2089_s15 }
 0x792   : > { %1633 = vperm.xlu1 %2113, %v1630_v27  }
 0x793   : > { %1601 = vrot.lane.b32.xlu0 %v2017_v26, %s2154_s19 }
 0x7e4   : > { %v1418_v28 = vpop.permute.xlu1 %1417 }
 0x7e5   : > { %v1421_v32 = vrot.slane %v1418_v28, 4 }
 0x7e8   : > { %v1444_v29 = vpop.permute.xlu1 %1443 }
 0x7e9   : > { %v1420_v30 = vpop.permute.xlu0 %1419  ;;  %v1447_v38 = vrot.slane %v1444_v29, 4 }
 0x7ea   : > { %v1422_v31 = vrot.slane %v1420_v30, 4  ;;  %1428 = vst.msk [vmem:[#allocation3 + $0x14] sm:$0xf] %vm886_vm13, %v1420_v30 }
 0x7ec   : > { %v1423_v33 = vsel %vm377_vm6, %v1421_v32, %v1422_v31  ;;  %v1470_v34 = vpop.permute.xlu1 %1469  ;;  %v1611_v32 = vld [vmem:[%s2539_s5] sm:$0xf] }
 0x7ed   : > { %v1424_v35 = vsel %vm2562_vm2, %v1418_v28, %v1423_v33  ;;  %v1446_v36 = vpop.permute.xlu0 %1445  ;;  %v1473_v52 = vrot.slane %v1470_v34, 4 }
 0x7ee   : > { %1427 = vst [vmem:[#allocation3 + $0xc] sm:$0xff] %v1424_v35  ;;  %v1448_v37 = vrot.slane %v1446_v36, 4  ;;  %1454 = vst.msk [vmem:[#allocation3 + $0x20] sm:$0xf] %vm886_vm13, %v1446_v36  ;;  %v1960_v39 = vcombine.low %v2016_v25, %v1424_v35  ;;  %v1961_v41 = vcombine.high %v2016_v25, %v1424_v35 }
 0x7f0   : > { %v1449_v43 = vsel %vm377_vm6, %v1447_v38, %v1448_v37  ;;  %v1496_v62 = vpop.permute.xlu1 %1495  ;;  %1720 = vmatprep.subr.bf16.mxu0 %v1961_v41 }
 0x7f1   : > { %v1450_v44 = vsel %vm2563_vm5, %v1444_v29, %v1449_v43  ;;  %v1472_v46 = vpop.permute.xlu0 %1471  ;;  %v2132_v47 = vld [vmem:[#allocation3 + $0x8] ss:$12 sps:$4 sm:$0xff]   ;;  %1721 = vmatpush1.bf16.msra.mxu0 %v1960_v39  ;;  %v1499_v58 = vrot.slane %v1496_v62, 4 }
 0x7f2   : > { %1453 = vst [vmem:[#allocation3 + $0x18] sm:$0xff] %v1450_v44  ;;  %v1474_v51 = vrot.slane %v1472_v46, 4  ;;  %1480 = vst.msk [vmem:[#allocation3 + $0x2c] sm:$0xf] %vm886_vm13, %v1472_v46  ;;  %2075 = vmatpush3.bf16.msra.mxu1 %v2132_v47 }
 0x7f3   : > { %2076 = vmatprep.subr.bf16.mxu1 %v2145_v0 }
 0x7f4   : > { %v1475_v53 = vsel %vm377_vm6, %v1473_v52, %v1474_v51  ;;  %v1522_v54 = vpop.permute.xlu1 %1521 }
 0x7f5   : > { %v1476_v55 = vsel %vm2564_vm9, %v1470_v34, %v1475_v53  ;;  %v1498_v56 = vpop.permute.xlu0 %1497  ;;  %v1525_v5 = vrot.slane %v1522_v54, 4 }
 0x7f6   : > { %1479 = vst [vmem:[#allocation3 + $0x24] sm:$0xff] %v1476_v55  ;;  %v1500_v57 = vrot.slane %v1498_v56, 4  ;;  %1506 = vst.msk [vmem:[#allocation3 + $0x38] sm:$0xf] %vm886_vm13, %v1498_v56  ;;  %v1963_v59 = vcombine.low %v1450_v44, %v1476_v55  ;;  %v1964_v60 = vcombine.high %v1450_v44, %v1476_v55 }
 0x7f8   : > { %v1501_v61 = vsel %vm377_vm6, %v1499_v58, %v1500_v57  ;;  %v1548_v63 = vpop.permute.xlu1 %1547  ;;  %1722 = vmatprep.subr.bf16.mxu0 %v1964_v60 }
 0x7f9   : > { %v1502_v1 = vsel %vm463_vm8, %v1496_v62, %v1501_v61  ;;  %v1524_v2 = vpop.permute.xlu0 %1523  ;;  %v2133_v3 = vld [vmem:[#allocation3 + $0x20] ss:$12 sps:$4 sm:$0xff]   ;;  %1723 = vmatpush1.bf16.msra.mxu0 %v1963_v59  ;;  %v1551_v12 = vrot.slane %v1548_v63, 4  ;;  %vm2566_vm8 = vcmask 752640  }
 0x7fa   : > { %1505 = vst [vmem:[#allocation3 + $0x30] sm:$0xff] %v1502_v1  ;;  %v1526_v4 = vrot.slane %v1524_v2, 4  ;;  %1532 = vst.msk [vmem:[#allocation3 + $0x44] sm:$0xf] %vm886_vm13, %v1524_v2  ;;  %2077 = vmatpush3.bf16.msra.mxu1 %v2133_v3 }
 0x7fb   : > { %2078 = vmatprep.subr.bf16.mxu1 %v2145_v0 }
 0x7fc   : > { %v1527_v6 = vsel %vm377_vm6, %v1525_v5, %v1526_v4  ;;  %v1574_v10 = vpop.permute.xlu1 %1573 }
 0x7fd   : > { %v1528_v7 = vsel %vm2565_vm14, %v1522_v54, %v1527_v6  ;;  %v1550_v8 = vpop.permute.xlu0 %1549  ;;  %v1577_v40 = vrot.slane %v1574_v10, 4 }
 0x7fe   : > { %v1552_v11 = vrot.slane %v1550_v8, 4  ;;  %1558 = vst.msk [vmem:[#allocation3 + $0x50] sm:$0xf] %vm886_vm13, %v1550_v8  ;;  %v1966_v13 = vcombine.low %v1502_v1, %v1528_v7  ;;  %v1967_v14 = vcombine.high %v1502_v1, %v1528_v7 }
 0x800   : > { %v1553_v15 = vsel %vm377_vm6, %v1551_v12, %v1552_v11  ;;  %1724 = vmatprep.subr.bf16.mxu0 %v1967_v14  ;;  %v1600_v42 = vpop.permute.xlu1 %1599 }
 0x801   : > { %v1554_v18 = vsel %vm2566_vm8, %v1548_v63, %v1553_v15  ;;  %v1576_v19 = vpop.permute.xlu0 %1575  ;;  %v2134_v20 = vld [vmem:[#allocation3 + $0x38] ss:$12 sps:$4 sm:$0xff]   ;;  %1725 = vmatpush1.bf16.msra.mxu0 %v1966_v13  ;;  %v1603_v49 = vrot.slane %v1600_v42, 4 }
 0x802   : > { %v1578_v21 = vrot.slane %v1576_v19, 4  ;;  %1584 = vst.msk [vmem:[#allocation3 + $0x5c] sm:$0xf] %vm886_vm13, %v1576_v19  ;;  %2079 = vmatpush3.bf16.msra.mxu1 %v2134_v20 }
 0x803   : > { %2080 = vmatprep.subr.bf16.mxu1 %v2145_v0 }
 0x804   : > { %v1579_v22 = vsel %vm377_vm6, %v1577_v40, %v1578_v21 }
 0x805   : > { %v1580_v45 = vsel %vm2567_vm3, %v1574_v10, %v1579_v22  ;;  %v1602_v23 = vpop.permute.xlu0 %1601 }
 0x806   : > { %v1604_v24 = vrot.slane %v1602_v23, 4  ;;  %1610 = vst.msk [vmem:[#allocation3 + $0x68] sm:$0xf] %vm886_vm13, %v1602_v23  ;;  %v1969_v48 = vcombine.low %v1554_v18, %v1580_v45  ;;  %v1970_v25 = vcombine.high %v1554_v18, %v1580_v45 }
 0x808   : > { %v1605_v50 = vsel %vm377_vm6, %v1603_v49, %v1604_v24  ;;  %1726 = vmatprep.subr.bf16.mxu0 %v1970_v25 }
 0x809   : > { %v1606_v26 = vsel %vm2568_vm4, %v1600_v42, %v1605_v50  ;;  %v2135_v27 = vld [vmem:[#allocation3 + $0x50] ss:$12 sps:$4 sm:$0xff]   ;;  %1727 = vmatpush1.bf16.msra.mxu0 %v1969_v48 }
 0x80a   : > { %v1973_v28 = vcombine.high %v1606_v26, %v1606_v26  ;;  %v1972_v29 = vcombine.low %v1606_v26, %v1606_v26  ;;  %2081 = vmatpush3.bf16.msra.mxu1 %v2135_v27 }
 0x80b   : > { %2082 = vmatprep.subr.bf16.mxu1 %v2145_v0 }
 0x80c   : > { %1975 = vmatprep.subr.msk.bf16.mxu0 %vm377_vm6, %v1973_v28  ;;  %v1712_v30 = vsel %vm377_vm6, %v1972_v29, 0 }
 0x80d   : > { %v2136_v31 = vld [vmem:[#allocation3 + $0x68] ss:$0 sps:$4 sm:$0xff]   ;;  %1729 = vmatpush1.bf16.msra.mxu0 %v1712_v30 }
 0x80e   : > { %v1718_v33 = vsel %vm377_vm6, %v2136_v31, 0  ;;  %vm1812_vm6 = vcmask 556032  }
 0x80f   : > { %2083 = vmatpush3.bf16.msra.mxu1 %v1718_v33 }
 0x810   : > { %1976 = vmatmul.mubr.msk.bf16.vlgmr.msra.gmra.mrb[8].mxu0 %vm1193_vm7, %v1611_v32 }
 0x811   : > { %v1634_v34 = vpop.permute.xlu1 %1633 }
 0x812   : > { %2085 = vmatmul.mubr.msk.bf16.vlgmr.msra.gmra.mrb[8].mxu1 %vm1193_vm7, %v1611_v32 }
 0x8e3   : > { %v1754_v35 = vpop.f32.mrb[8].mxu0 }
 0x8e4   : > { %v1755_v0 = vadd.f32 %v1754_v35, %v1634_v34  ;;  %v1756_v36 = vpop.f32.mrb[9].mxu0 }
 0x8e5   : > { %v1757_v37 = vadd.f32 %v1756_v36, %v1634_v34  ;;  %v1758_v38 = vpop.f32.mrb[10].mxu0  ;;  %v1795_v39 = vpop.f32.mrb[8].mxu1 }
 0x8e6   : > { %v1801_v41 = vmul.f32 0.2, %v1755_v0  ;;  %v1759_v43 = vpop.f32.mrb[11].mxu0  ;;  %v1796_v62 = vadd.f32 %v1795_v39, %v1634_v34  ;;  %v2086_v44 = vpop.f32.mrb[9].mxu1 }
 0x8e7   : > { %v1802_v46 = vmul.f32 0.2, %v1757_v37  ;;  %v1798_v51 = vpop.f32.mrb[10].mxu1 }
 0x8e8   : > { %v1804_v47 = vmax.f32 %v1755_v0, %v1801_v41  ;;  %v1803_v52 = vmul.f32 0.2, %v1796_v62  ;;  %v2087_v54 = vpop.f32.mrb[11].mxu1 }
 0x8e9   : > { %v1805_v53 = vmax.f32 %v1757_v37, %v1802_v46 }
 0x8ea   : > { %v1807_v55 = vadd.f32 %v1804_v47, %v2294_v17  ;;  %v1806_v56 = vmax.f32 %v1796_v62, %v1803_v52 }
 0x8eb   : > { %v1808_v57 = vadd.f32 %v1805_v53, %v2290_v16 }
 0x8ec   : > { %1810 = vst [vmem:[%s305_s18] sm:$0xff] %v1807_v55  ;;  %v1809_v58 = vadd.f32 %v1806_v56, %v2286_v9 }
 0x8ed   : > { %1811 = vst [vmem:[%s305_s18 + $0x8] sm:$0xff] %v1808_v57 }
 0x8ee   : > { %1813 = vst.msk [vmem:[%s305_s18 + $0x10] sm:$0xff] %vm1812_vm6, %v1809_v58 }
 0x8ef PF: > { %s18_s27 = sadd.s32 1, %s2143_s27  }
 0x8f0   : > { %p15_p4 = scmp.ge.s32.totalorder %s18_s27, 4  }
 0x8f2   :  { %17 = sbr.rel (!%p15_p4) target bundleno = 1 (0x1), region = 82 }

</bundles_post_ra>
